<compile_context>
chip_gen: v5e
topology: v5e:2x2
jax: 0.10.0
libtpu: 0.0.40
codegen_flags: <defaults>
</compile_context>

<pallas_src>
import functools

import jax
import jax.numpy as jnp
from jax.experimental import pallas as pl
from jax.experimental.pallas import tpu as pltpu


def _round_up(x, m):
    return (x + m - 1) // m * m


# ---------------------------------------------------------------------------
# Fused kernel.  Grid = (m_tiles, 2, v_tiles), vocab axis fastest.
#   phase 0 : (vi==0) run Linear1+ReLU once, cache h in VMEM; for every vocab
#             tile compute logits and update the online logsumexp scratch.
#   phase 1 : recompute logits for every vocab tile and store
#             out = logits - lse with lane-dense f32 stores.
# ---------------------------------------------------------------------------
def _nnlm_kernel(x_ref, w1_ref, b1_ref, w2_ref, b2_ref, out_ref,
                 h_sc, m_sc, l_sc, lse_sc, *, vocab, vocab_pad, tile_v):
    ph = pl.program_id(1)
    vi = pl.program_id(2)
    nv = pl.num_programs(2)

    # First step of this batch tile: small first GEMM + ReLU, cache hidden
    # activations as bf16 (feeds the MXU directly), reset online-LSE state.
    @pl.when((ph == 0) & (vi == 0))
    def _():
        h = jnp.dot(x_ref[...], w1_ref[...],
                    preferred_element_type=jnp.float32)
        h = jnp.maximum(h + b1_ref[...], 0.0)
        h_sc[...] = h.astype(h_sc.dtype)
        m_sc[...] = jnp.full_like(m_sc, -jnp.inf)
        l_sc[...] = jnp.zeros_like(l_sc)

    # Second GEMM on this vocab tile (bf16 operands, f32 accumulation).
    logits = jnp.dot(h_sc[...], w2_ref[...],
                     preferred_element_type=jnp.float32)
    logits = logits + b2_ref[...]

    if vocab_pad != vocab:
        # Mask padded vocab lanes with a large finite negative value.  The
        # first vocab tile always contains real columns, so the running max
        # stays finite and no inf/NaN can appear in the LSE update.
        col = vi * tile_v + jax.lax.broadcasted_iota(jnp.int32, logits.shape, 1)
        logits = jnp.where(col < vocab, logits, jnp.float32(-1e30))

    @pl.when(ph == 0)
    def _():
        m_prev = m_sc[...]
        m_new = jnp.maximum(m_prev, jnp.max(logits, axis=-1, keepdims=True))
        l_sc[...] = (jnp.exp(m_prev - m_new) * l_sc[...]
                     + jnp.sum(jnp.exp(logits - m_new), axis=-1, keepdims=True))
        m_sc[...] = m_new

    @pl.when((ph == 0) & (vi == nv - 1))
    def _():
        lse_sc[...] = m_sc[...] + jnp.log(l_sc[...])

    @pl.when(ph == 1)
    def _():
        out_ref[...] = (logits - lse_sc[...]).astype(out_ref.dtype)


# ---------------------------------------------------------------------------
# One-time parameter preparation (do NOT call per forward step).
# ---------------------------------------------------------------------------
def _choose_vocab_tiling(vocab, hidden, din, tile_m=128):
    """Pick the largest lane-dense vocab tile that keeps per-step VMEM small."""
    budget = 12 * 1024 * 1024   # fits v5e's 16 MiB scoped default, v6e/v7x fine

    def step_bytes(tv):
        return (2 * hidden * tv * 2       # w2 tile, bf16, double-buffered
                + 2 * tv * 4              # b2 tile
                + 2 * tile_m * tv * 4     # out tile, f32, double-buffered
                + 2 * tile_m * din * 2    # x tile (resident)
                + 2 * din * hidden * 2    # w1 (resident)
                + tile_m * hidden * 2     # h scratch
                + 3 * tile_m * 4)         # m / l / lse scratch

    tile_v = 2048
    while tile_v > 256 and step_bytes(tile_v) > budget:
        tile_v //= 2
    tile_v = min(tile_v, _round_up(vocab, 256))
    # Re-balance so the padded tail is at most one 256-lane group.
    v_tiles = -(-vocab // tile_v)
    tile_v = _round_up(-(-vocab // v_tiles), 256)
    vocab_pad = v_tiles * tile_v
    return tile_v, vocab_pad


def prepare_params(embed_w, w1, b1, w2, b2):
    """Cast matmul operands to bf16 and pad W2/b2 along vocab -- ONCE.

    Doing this outside the forward pass removes a full extra HBM pass over
    W2 (the largest tensor) on every call.
    """
    vocab, word = embed_w.shape
    din, hidden = w1.shape
    tile_v, vocab_pad = _choose_vocab_tiling(vocab, hidden, din)
    w2p = jnp.zeros((hidden, vocab_pad), jnp.bfloat16).at[:, :vocab].set(
        w2.astype(jnp.bfloat16))
    b2p = jnp.zeros((1, vocab_pad), jnp.float32).at[:, :vocab].set(
        b2.reshape(1, vocab).astype(jnp.float32))
    return dict(
        embed=embed_w.astype(jnp.bfloat16),    # padding_idx=0 row already zero
        w1=w1.astype(jnp.bfloat16),
        b1=b1.reshape(1, hidden).astype(jnp.float32),
        w2=w2p, b2=b2p,
        vocab=vocab, vocab_pad=vocab_pad, tile_v=tile_v,
        word=word, hidden=hidden, din=din,
    )


# ---------------------------------------------------------------------------
# Forward pass.
# ---------------------------------------------------------------------------
def nnlm_forward(ctx_ids, params):
    """ctx_ids: (B, ctx) int32.  Returns (B, vocab) f32 log-probs."""
    B, ctx = ctx_ids.shape
    embed, w1, b1 = params["embed"], params["w1"], params["b1"]
    w2, b2 = params["w2"], params["b2"]
    vocab, vocab_pad, tile_v = params["vocab"], params["vocab_pad"], params["tile_v"]
    word, hidden, din = params["word"], params["hidden"], params["din"]
    assert din == ctx * word

    # Embedding gather + flatten (bf16 table -> no per-call cast/pad pass).
    # TODO(synk): fuse this gather into the kernel (PrefetchScalarGridSpec +
    # manual per-row DMA) to drop this HBM materialization of activations.
    x = jnp.take(embed, ctx_ids, axis=0).reshape(B, din)

    # Batch tiling: keep >= 2 batch tiles when possible so the "parallel"
    # grid axis can shard across v7x's two TensorCores.
    if B >= 256:
        tile_m = 128
    elif B >= 16:
        tile_m = _round_up(pl.cdiv(B, 2), 8)
    else:
        tile_m = B                      # single full-extent block, no padding
    b_pad = _round_up(B, tile_m)
    if b_pad != B:
        x = jnp.zeros((b_pad, din), x.dtype).at[:B].set(x)
    m_tiles = b_pad // tile_m
    v_tiles = vocab_pad // tile_v

    flops = 2 * b_pad * din * hidden + 2 * (2 * b_pad * hidden * vocab_pad)
    bytes_accessed = (b_pad * din * 2 + din * hidden * 2 + hidden * 4
                      + m_tiles * 2 * hidden * vocab_pad * 2   # W2 streamed 2x/tile
                      + vocab_pad * 4 + b_pad * vocab_pad * 4)
    cost = pl.CostEstimate(flops=flops,
                           transcendentals=b_pad * vocab_pad + b_pad,
                           bytes_accessed=bytes_accessed)

    kernel = functools.partial(_nnlm_kernel, vocab=vocab,
                               vocab_pad=vocab_pad, tile_v=tile_v)

    # NOTE: if a profile shows exposed w2 DMA at the start of each batch tile,
    # try pipeline_mode=pl.Buffered(3) on the w2/b2 specs (cheap experiment).
    out = pl.pallas_call(
        kernel,
        out_shape=jax.ShapeDtypeStruct((b_pad, vocab_pad), jnp.float32),
        grid=(m_tiles, 2, v_tiles),
        in_specs=[
            pl.BlockSpec((tile_m, din), lambda mi, ph, vi: (mi, 0)),      # x
            pl.BlockSpec((din, hidden), lambda mi, ph, vi: (0, 0)),       # w1
            pl.BlockSpec((1, hidden), lambda mi, ph, vi: (0, 0)),         # b1
            pl.BlockSpec((hidden, tile_v), lambda mi, ph, vi: (0, vi)),   # w2 tile
            pl.BlockSpec((1, tile_v), lambda mi, ph, vi: (0, vi)),        # b2 tile
        ],
        # Phase 0 pins the out block to (mi, 0) (pure revisit, never flushed
        # with garbage); phase 1 advances it per vocab tile and writes real data.
        out_specs=pl.BlockSpec((tile_m, tile_v),
                               lambda mi, ph, vi: (mi, vi * ph)),
        scratch_shapes=[
            pltpu.VMEM((tile_m, hidden), jnp.bfloat16),   # cached hidden acts
            pltpu.VMEM((tile_m, 1), jnp.float32),         # running max
            pltpu.VMEM((tile_m, 1), jnp.float32),         # running sum
            pltpu.VMEM((tile_m, 1), jnp.float32),         # logsumexp
        ],
        compiler_params=pltpu.CompilerParams(
            dimension_semantics=("parallel", "arbitrary", "arbitrary")),
        cost_estimate=cost,
    )(x, w1, b1, w2, b2)

    return out[:B, :vocab]


# ---------------------------------------------------------------------------
# Parameter init matching the PyTorch module.
# ---------------------------------------------------------------------------
def _xavier_uniform(key, shape, fan_in, fan_out, dtype=jnp.float32):
    limit = jnp.sqrt(6.0 / (fan_in + fan_out))
    return jax.random.uniform(key, shape, dtype, minval=-limit, maxval=limit)


def init_params(key, vocab_size, word_size, ctx_size, hidden_size):
    k_e, k_w1, k_b1, k_w2, k_b2 = jax.random.split(key, 5)
    # Embedding: xavier_uniform, padding_idx=0 row zeroed (as nn.Embedding does).
    embed_w = _xavier_uniform(k_e, (vocab_size, word_size), vocab_size, word_size)
    embed_w = embed_w.at[0].set(0.0)
    in_feat = ctx_size * word_size
    # nn.Linear default init: U(-1/sqrt(fan_in), 1/sqrt(fan_in)); W stored (in, out).
    lim1 = 1.0 / jnp.sqrt(in_feat)
    w1 = jax.random.uniform(k_w1, (in_feat, hidden_size), jnp.float32, -lim1, lim1)
    b1 = jax.random.uniform(k_b1, (hidden_size,), jnp.float32, -lim1, lim1)
    lim2 = 1.0 / jnp.sqrt(hidden_size)
    w2 = jax.random.uniform(k_w2, (hidden_size, vocab_size), jnp.float32, -lim2, lim2)
    b2 = jax.random.uniform(k_b2, (vocab_size,), jnp.float32, -lim2, lim2)
    return embed_w, w1, b1, w2, b2


if __name__ == "__main__":
    # Small shapes consistent with the module's forward.  vocab chosen so the
    # kernel exercises multiple vocab tiles, ragged-tile masking, both phases,
    # and a multi-tile (padded) batch axis.
    VOCAB = 2500
    WORD = 32
    CTX = 8
    HIDDEN = 128
    B = 20

    key = jax.random.PRNGKey(0)
    k_params, k_ids = jax.random.split(key)
    embed_w, w1, b1, w2, b2 = init_params(k_params, VOCAB, WORD, CTX, HIDDEN)
    ctx_ids = jax.random.randint(k_ids, (B, CTX), 0, VOCAB, dtype=jnp.int32)

    # One-time prep (pad + bf16 cast of weights); reused across forward calls.
    params = prepare_params(embed_w, w1, b1, w2, b2)

    # TODO(synk): dropout on embeddings is training-only; inference path implemented.
    out = jax.block_until_ready(nnlm_forward(ctx_ids, params))

    # Pure-JAX f32 reference.
    x_ref = jnp.take(embed_w, ctx_ids, axis=0).reshape(B, -1)
    h_ref = jnp.maximum(x_ref @ w1 + b1.reshape(1, -1), 0.0)
    ref = jax.nn.log_softmax(h_ref @ w2 + b2.reshape(1, -1), axis=-1)

    assert out.shape == (B, VOCAB)
    probs_sum = jnp.sum(jnp.exp(out), axis=-1)
    assert jnp.allclose(probs_sum, 1.0, atol=1e-3), probs_sum
    assert jnp.allclose(out, ref, atol=3e-2), float(jnp.max(jnp.abs(out - ref)))
    print("KERNEL_OK")
</pallas_src>

<mosaic_0001>
module attributes {stable_mosaic.version = 11 : i64} {
  func.func @_nnlm_kernel(%arg0: i32, %arg1: i32, %arg2: i32, %arg3: memref<16x256xbf16, #tpu.memory_space<vmem>>, %arg4: memref<256x128xbf16, #tpu.memory_space<vmem>>, %arg5: memref<1x128xf32, #tpu.memory_space<vmem>>, %arg6: memref<128x1280xbf16, #tpu.memory_space<vmem>>, %arg7: memref<1x1280xf32, #tpu.memory_space<vmem>>, %arg8: memref<16x1280xf32, #tpu.memory_space<vmem>>, %arg9: memref<16x128xbf16, #tpu.memory_space<vmem>>, %arg10: memref<16x1xf32, #tpu.memory_space<vmem>>, %arg11: memref<16x1xf32, #tpu.memory_space<vmem>>, %arg12: memref<16x1xf32, #tpu.memory_space<vmem>>) attributes {dimension_semantics = [#tpu.dimension_semantics<parallel>, #tpu.dimension_semantics<arbitrary>, #tpu.dimension_semantics<arbitrary>], iteration_bounds = array<i64: 2, 2, 2>, scalar_prefetch = 0 : i64, scratch_operands = 4 : i64, tpu.core_type = #tpu.core_type<tc>, window_params = [{transform_indices = @transform_0, window_bounds = array<i64: 16, 256>}, {pipeline_mode = #tpu.pipeline_mode<synchronous>, transform_indices = @transform_1, window_bounds = array<i64: 256, 128>}, {pipeline_mode = #tpu.pipeline_mode<synchronous>, transform_indices = @transform_2, window_bounds = array<i64: 1, 128>}, {transform_indices = @transform_3, window_bounds = array<i64: 128, 1280>}, {transform_indices = @transform_4, window_bounds = array<i64: 1, 1280>}, {transform_indices = @transform_5, window_bounds = array<i64: 16, 1280>}]} {
    %c0_i32 = arith.constant 0 : i32
    %0 = arith.cmpi eq, %arg1, %c0_i32 : i32
    %c0_i32_0 = arith.constant 0 : i32
    %1 = arith.cmpi eq, %arg2, %c0_i32_0 : i32
    %2 = arith.andi %0, %1 : i1
    %3 = arith.extui %2 : i1 to i32
    %c0_i32_1 = arith.constant 0 : i32
    %4 = arith.cmpi ne, %3, %c0_i32_1 : i32
    scf.if %4 {
      %c0_14 = arith.constant 0 : index
      %c0_15 = arith.constant 0 : index
      %30 = vector.load %arg3[%c0_14, %c0_15] : memref<16x256xbf16, #tpu.memory_space<vmem>>, vector<16x256xbf16>
      %c0_16 = arith.constant 0 : index
      %c0_17 = arith.constant 0 : index
      %31 = vector.load %arg4[%c0_16, %c0_17] : memref<256x128xbf16, #tpu.memory_space<vmem>>, vector<256x128xbf16>
      %cst_18 = arith.constant dense<0.000000e+00> : vector<16x128xf32>
      %32 = tpu.matmul %30, %31, %cst_18 {dimension_numbers = #tpu.dot_dimension_numbers<[1], [0], [0], [1], [0, 0, 1, 1], [], []>} : vector<16x256xbf16>, vector<256x128xbf16>, vector<16x128xf32> -> vector<16x128xf32>
      %c0_19 = arith.constant 0 : index
      %c0_20 = arith.constant 0 : index
      %33 = vector.load %arg5[%c0_19, %c0_20] : memref<1x128xf32, #tpu.memory_space<vmem>>, vector<1x128xf32>
      %34 = vector.broadcast %33 : vector<1x128xf32> to vector<16x128xf32>
      %35 = arith.addf %32, %34 : vector<16x128xf32>
      %cst_21 = arith.constant 0.000000e+00 : f32
      %36 = vector.broadcast %cst_21 : f32 to vector<16x128xf32>
      %37 = arith.maximumf %35, %36 : vector<16x128xf32>
      %38 = arith.truncf %37 : vector<16x128xf32> to vector<16x128xbf16>
      %c0_22 = arith.constant 0 : index
      %c0_23 = arith.constant 0 : index
      %39 = vector.load %arg9[%c0_22, %c0_23] : memref<16x128xbf16, #tpu.memory_space<vmem>>, vector<16x128xbf16>
      tpu.vector_store %arg9[%c0_22, %c0_23], %38 {strides = array<i32>} : memref<16x128xbf16, #tpu.memory_space<vmem>>, vector<16x128xbf16>,
      %cst_24 = arith.constant 0xFF800000 : f32
      %40 = vector.broadcast %cst_24 : f32 to vector<16x1xf32>
      %c0_25 = arith.constant 0 : index
      %c0_26 = arith.constant 0 : index
      %41 = vector.load %arg10[%c0_25, %c0_26] : memref<16x1xf32, #tpu.memory_space<vmem>>, vector<16x1xf32>
      tpu.vector_store %arg10[%c0_25, %c0_26], %40 {strides = array<i32>} : memref<16x1xf32, #tpu.memory_space<vmem>>, vector<16x1xf32>,
      %cst_27 = arith.constant 0.000000e+00 : f32
      %42 = vector.broadcast %cst_27 : f32 to vector<16x1xf32>
      %c0_28 = arith.constant 0 : index
      %c0_29 = arith.constant 0 : index
      %43 = vector.load %arg11[%c0_28, %c0_29] : memref<16x1xf32, #tpu.memory_space<vmem>>, vector<16x1xf32>
      tpu.vector_store %arg11[%c0_28, %c0_29], %42 {strides = array<i32>} : memref<16x1xf32, #tpu.memory_space<vmem>>, vector<16x1xf32>,
    } else {
    }
    %c0 = arith.constant 0 : index
    %c0_2 = arith.constant 0 : index
    %5 = vector.load %arg9[%c0, %c0_2] : memref<16x128xbf16, #tpu.memory_space<vmem>>, vector<16x128xbf16>
    %c0_3 = arith.constant 0 : index
    %c0_4 = arith.constant 0 : index
    %6 = vector.load %arg6[%c0_3, %c0_4] : memref<128x1280xbf16, #tpu.memory_space<vmem>>, vector<128x1280xbf16>
    %cst = arith.constant dense<0.000000e+00> : vector<16x1280xf32>
    %7 = tpu.matmul %5, %6, %cst {dimension_numbers = #tpu.dot_dimension_numbers<[1], [0], [0], [1], [0, 0, 1, 1], [], []>} : vector<16x128xbf16>, vector<128x1280xbf16>, vector<16x1280xf32> -> vector<16x1280xf32>
    %c0_5 = arith.constant 0 : index
    %c0_6 = arith.constant 0 : index
    %8 = vector.load %arg7[%c0_5, %c0_6] : memref<1x1280xf32, #tpu.memory_space<vmem>>, vector<1x1280xf32>
    %9 = vector.broadcast %8 : vector<1x1280xf32> to vector<16x1280xf32>
    %10 = arith.addf %7, %9 : vector<16x1280xf32>
    %c1280_i32 = arith.constant 1280 : i32
    %11 = arith.muli %arg2, %c1280_i32 : i32
    %12 = tpu.iota {dimensions = array<i32: 1>} : vector<16x1280xi32>
    %13 = vector.broadcast %11 : i32 to vector<16x1280xi32>
    %14 = arith.addi %13, %12 : vector<16x1280xi32>
    %c2500_i32 = arith.constant 2500 : i32
    %15 = vector.broadcast %c2500_i32 : i32 to vector<16x1280xi32>
    %16 = arith.cmpi slt, %14, %15 : vector<16x1280xi32>
    %cst_7 = arith.constant -1.000000e+30 : f32
    %17 = vector.broadcast %cst_7 : f32 to vector<16x1280xf32>
    %18 = arith.select %16, %10, %17 : vector<16x1280xi1>, vector<16x1280xf32>
    %c0_i32_8 = arith.constant 0 : i32
    %19 = arith.cmpi eq, %arg1, %c0_i32_8 : i32
    %20 = arith.extui %19 : i1 to i32
    %c0_i32_9 = arith.constant 0 : i32
    %21 = arith.cmpi ne, %20, %c0_i32_9 : i32
    scf.if %21 {
      %c0_14 = arith.constant 0 : index
      %c0_15 = arith.constant 0 : index
      %30 = vector.load %arg10[%c0_14, %c0_15] : memref<16x1xf32, #tpu.memory_space<vmem>>, vector<16x1xf32>
      %cst_16 = arith.constant dense<0xFF800000> : vector<16xf32>
      %31 = vector.multi_reduction <maximumf>, %18, %cst_16 [1] : vector<16x1280xf32> to vector<16xf32>
      %32 = vector.shape_cast %31 : vector<16xf32> to vector<16x1xf32>
      %33 = arith.maximumf %30, %32 : vector<16x1xf32>
      %34 = arith.subf %30, %33 : vector<16x1xf32>
      %35 = math.exp %34 : vector<16x1xf32>
      %c0_17 = arith.constant 0 : index
      %c0_18 = arith.constant 0 : index
      %36 = vector.load %arg11[%c0_17, %c0_18] : memref<16x1xf32, #tpu.memory_space<vmem>>, vector<16x1xf32>
      %37 = arith.mulf %35, %36 : vector<16x1xf32>
      %38 = vector.broadcast %33 : vector<16x1xf32> to vector<16x1280xf32>
      %39 = arith.subf %18, %38 : vector<16x1280xf32>
      %40 = math.exp %39 : vector<16x1280xf32>
      %cst_19 = arith.constant dense<0.000000e+00> : vector<16xf32>
      %41 = vector.multi_reduction <add>, %40, %cst_19 [1] : vector<16x1280xf32> to vector<16xf32>
      %42 = vector.shape_cast %41 : vector<16xf32> to vector<16x1xf32>
      %43 = arith.addf %37, %42 : vector<16x1xf32>
      %c0_20 = arith.constant 0 : index
      %c0_21 = arith.constant 0 : index
      %44 = vector.load %arg11[%c0_20, %c0_21] : memref<16x1xf32, #tpu.memory_space<vmem>>, vector<16x1xf32>
      tpu.vector_store %arg11[%c0_20, %c0_21], %43 {strides = array<i32>} : memref<16x1xf32, #tpu.memory_space<vmem>>, vector<16x1xf32>,
      %c0_22 = arith.constant 0 : index
      %c0_23 = arith.constant 0 : index
      %45 = vector.load %arg10[%c0_22, %c0_23] : memref<16x1xf32, #tpu.memory_space<vmem>>, vector<16x1xf32>
      tpu.vector_store %arg10[%c0_22, %c0_23], %33 {strides = array<i32>} : memref<16x1xf32, #tpu.memory_space<vmem>>, vector<16x1xf32>,
    } else {
    }
    %c0_i32_10 = arith.constant 0 : i32
    %22 = arith.cmpi eq, %arg1, %c0_i32_10 : i32
    %c1_i32 = arith.constant 1 : i32
    %23 = arith.cmpi eq, %arg2, %c1_i32 : i32
    %24 = arith.andi %22, %23 : i1
    %25 = arith.extui %24 : i1 to i32
    %c0_i32_11 = arith.constant 0 : i32
    %26 = arith.cmpi ne, %25, %c0_i32_11 : i32
    scf.if %26 {
      %c0_14 = arith.constant 0 : index
      %c0_15 = arith.constant 0 : index
      %30 = vector.load %arg10[%c0_14, %c0_15] : memref<16x1xf32, #tpu.memory_space<vmem>>, vector<16x1xf32>
      %c0_16 = arith.constant 0 : index
      %c0_17 = arith.constant 0 : index
      %31 = vector.load %arg11[%c0_16, %c0_17] : memref<16x1xf32, #tpu.memory_space<vmem>>, vector<16x1xf32>
      %32 = math.log %31 : vector<16x1xf32>
      %33 = arith.addf %30, %32 : vector<16x1xf32>
      %c0_18 = arith.constant 0 : index
      %c0_19 = arith.constant 0 : index
      %34 = vector.load %arg12[%c0_18, %c0_19] : memref<16x1xf32, #tpu.memory_space<vmem>>, vector<16x1xf32>
      tpu.vector_store %arg12[%c0_18, %c0_19], %33 {strides = array<i32>} : memref<16x1xf32, #tpu.memory_space<vmem>>, vector<16x1xf32>,
    } else {
    }
    %c1_i32_12 = arith.constant 1 : i32
    %27 = arith.cmpi eq, %arg1, %c1_i32_12 : i32
    %28 = arith.extui %27 : i1 to i32
    %c0_i32_13 = arith.constant 0 : i32
    %29 = arith.cmpi ne, %28, %c0_i32_13 : i32
    scf.if %29 {
      %c0_14 = arith.constant 0 : index
      %c0_15 = arith.constant 0 : index
      %30 = vector.load %arg12[%c0_14, %c0_15] : memref<16x1xf32, #tpu.memory_space<vmem>>, vector<16x1xf32>
      %31 = vector.broadcast %30 : vector<16x1xf32> to vector<16x1280xf32>
      %32 = arith.subf %18, %31 : vector<16x1280xf32>
      %c0_16 = arith.constant 0 : index
      %c0_17 = arith.constant 0 : index
      %33 = vector.load %arg8[%c0_16, %c0_17] : memref<16x1280xf32, #tpu.memory_space<vmem>>, vector<16x1280xf32>
      tpu.vector_store %arg8[%c0_16, %c0_17], %32 {strides = array<i32>} : memref<16x1280xf32, #tpu.memory_space<vmem>>, vector<16x1280xf32>,
    } else {
    }
    return
  }
  func.func @transform_0(%arg0: i32, %arg1: i32, %arg2: i32) -> (i32, i32) {
    %c0_i32 = arith.constant 0 : i32
    %c0_i32_0 = arith.constant 0 : i32
    return %arg0, %c0_i32 : i32, i32
  }
  func.func @transform_1(%arg0: i32, %arg1: i32, %arg2: i32) -> (i32, i32) {
    %c0_i32 = arith.constant 0 : i32
    %c0_i32_0 = arith.constant 0 : i32
    %c0_i32_1 = arith.constant 0 : i32
    return %c0_i32, %c0_i32_0 : i32, i32
  }
  func.func @transform_2(%arg0: i32, %arg1: i32, %arg2: i32) -> (i32, i32) {
    %c0_i32 = arith.constant 0 : i32
    %c0_i32_0 = arith.constant 0 : i32
    %c0_i32_1 = arith.constant 0 : i32
    return %c0_i32, %c0_i32_0 : i32, i32
  }
  func.func @transform_3(%arg0: i32, %arg1: i32, %arg2: i32) -> (i32, i32) {
    %c0_i32 = arith.constant 0 : i32
    %c0_i32_0 = arith.constant 0 : i32
    return %c0_i32, %arg2 : i32, i32
  }
  func.func @transform_4(%arg0: i32, %arg1: i32, %arg2: i32) -> (i32, i32) {
    %c0_i32 = arith.constant 0 : i32
    %c0_i32_0 = arith.constant 0 : i32
    return %c0_i32, %arg2 : i32, i32
  }
  func.func @transform_5(%arg0: i32, %arg1: i32, %arg2: i32) -> (i32, i32) {
    %0 = arith.muli %arg2, %arg1 : i32
    %c0_i32 = arith.constant 0 : i32
    return %arg0, %0 : i32, i32
  }
}

</mosaic_0001>

<bundles_post_ra>
// kernel: tpu_custom_call.1
= control target key start
LH: loop header
LB: loop body
LE: loop exit
PB: predicated region body
PF: predicated region fallthrough
CT: control target
= control target key end

     0   :  { %s3447_s0 = inlined_call_operand.hbm [shape: bf16[32,256], index: 0, kind: input, shape index: {}]   ;;  %s3448_s1 = inlined_call_operand.hbm [shape: bf16[256,128], index: 1, kind: input, shape index: {}]   ;;  %s3449_s2 = inlined_call_operand.vmem [shape: f32[1,128], index: 2, kind: input, shape index: {}]   ;;  %s3450_s3 = inlined_call_operand.hbm [shape: bf16[128,2560], index: 3, kind: input, shape index: {}]   ;;  %s3451_s4 = inlined_call_operand.hbm [shape: f32[1,2560], index: 4, kind: input, shape index: {}]   ;;  %s3452_s5 = inlined_call_operand.hbm [shape: f32[32,2560], index: 5, kind: output, shape index: {}]  }
   0x1   :  { %3461 = sst [smem:[#allocation30_spill]] %s3447_s0 }
   0x2   :  { %3462 = sst [smem:[#allocation31_spill]] %s3448_s1 }
   0x3   :  { %3463 = sst [smem:[#allocation32_spill]] %s3449_s2 }
   0x4   :  { %3464 = sst [smem:[#allocation33_spill]] %s3450_s3 }
   0x5   :  { %3465 = sst [smem:[#allocation34_spill]] %s3451_s4 }
   0x6   :  { %3466 = sst [smem:[#allocation35_spill]] %s3452_s5 }
   0x7   :  { %10 = vsyncpa [#allocation7], 0 }
   0x8   :  { %12 = vsyncpa [#allocation7 + $0x1], 0 }
   0x9   :  { %13 = vsyncpa [#allocation10], 0 }
   0xa   :  { %14 = vsyncpa [#allocation8], 0 }
   0xb   :  { %16 = vsyncpa [#allocation8 + $0x1], 0  ;;  %s2731_s18 = smov 0   ;;  %s2733_s19 = smov 0  }
   0xc   :  { %s2735_s20 = smov 0   ;;  %s2737_s21 = smov 0  }
   0xd   :  { %s2739_s22 = smov 0   ;;  %s2741_s23 = smov 0  }
   0xe   :  { %s2743_s24 = smov 0   ;;  %s2745_s25 = smov 0  }
   0xf   :  { %s2747_s26 = smov 0   ;;  %s2749_s27 = smov 0  }
  0x10   :  { %s2751_s28 = smov 0   ;;  %s2753_s29 = smov 0  }
  0x11   :  { %s2755_s30 = smov 0   ;;  %s2757_s6 = smov 0  }
  0x12   :  { %s2759_s7 = smov 0   ;;  %s2761_s8 = smov 0  }
  0x13 LB: > { %3467 = sst [smem:[#allocation18_spill]] %s2656_s26  ;;  %s34_s9 = sadd.s32 1, %s2672_s30  ;;  %s2684_s8 = sphi %s2761_s8, %s22_s8   ;;  %s2680_s7 = sphi %s2759_s7, %s3512_s7   ;;  %s2676_s6 = sphi %s2757_s6, %s3511_s6   ;;  %s2672_s30 = sphi %s2755_s30, %s3524_s30   ;;  %s2668_s29 = sphi %s2753_s29, %s3509_s29   ;;  %s2664_s28 = sphi %s2751_s28, %s3523_s28   ;;  %s2660_s27 = sphi %s2749_s27, %s3522_s27   ;;  %s2656_s26 = sphi %s2747_s26, %s3507_s26   ;;  %s2652_s25 = sphi %s2745_s25, %s3521_s25   ;;  %s2648_s24 = sphi %s2743_s24, %s3520_s24   ;;  %s2644_s23 = sphi %s2741_s23, %s3519_s23   ;;  %s2640_s22 = sphi %s2739_s22, %s3518_s22   ;;  %s2636_s21 = sphi %s2737_s21, %s3517_s21   ;;  %s2632_s20 = sphi %s2735_s20, %s3516_s20   ;;  %s2628_s19 = sphi %s2733_s19, %s3515_s19   ;;  %s2624_s18 = sphi %s2731_s18, %s3513_s18  }
  0x14   : > { %3468 = sst [smem:[#allocation19_spill]] %s2660_s27  ;;  %s37_s10 = sadd.s32 1, %s2676_s6 }
  0x15   : > { %3469 = sst [smem:[#allocation20_spill]] %s2664_s28  ;;  %p35_p0 = scmp.ge.s32.totalorder %s34_s9, 2 }
  0x16   : > { %3470 = sst [smem:[#allocation21_spill]] %s2668_s29  ;;  %s41_s11 = sadd.s32 1, %s2680_s7 }
  0x17   : > { %3471 = sst [smem:[#allocation22_spill]] %s2676_s6  ;;  %s48_s12 = sadd.s32 1, %s2656_s26 }
  0x18   : > { %3472 = sst [smem:[#allocation23_spill]] %s2680_s7  ;;  %p55_p1 = scmp.ne.s32.totalorder %s2656_s26, %s2652_s25 }
  0x19   : > { %s3526_s9 = smov (%p35_p0, %s34_s9), 0  ;;  %s3528_s10 = smov (!%p35_p0, %s37_s10), %s2676_s6 }
  0x1a   : > { %3473 = sst [smem:[#allocation24_spill]] %s3526_s9  ;;  %p56_p2 = scmp.eq.s32.totalorder %s2684_s8, 0 }
  0x1b   : > { %p61_p3 = scmp.ne.s32.totalorder %s2652_s25, %s2648_s24  ;;  %p39_p4 = scmp.ge.s32.totalorder %s3528_s10, 2 }
  0x1c   : > { %s113_s13 = ssub.s32 %s2672_s30, %s3526_s9  ;;  %p2827_p5 = por %p56_p2, %p55_p1 }
  0x1d   : > { %p114_p6 = scmp.eq.s32.totalorder %s113_s13, 0  ;;  %s3530_s10 = smov (%p39_p4, %s3528_s10), 0 }
  0x1e   : > { %3475 = sst [smem:[#allocation25_spill]] %s3530_s10  ;;  %s3532_s11 = smov (!%p39_p4, %s41_s11), %s2680_s7 }
  0x1f   : > { %s116_s15 = sadd.s32 1, %s2644_s23  ;;  %p123_p7 = scmp.ne.s32.totalorder %s2644_s23, %s2640_s22 }
  0x20   : > { %p43_p8 = scmp.ge.s32.totalorder %s3532_s11, 2  ;;  %s165_s16 = smul.u32 %s2672_s30, %s2676_s6 }
  0x21   : > { %s2840_s17 = scalar_select %p114_p6, %s2644_s23, %s116_s15  }
  0x22   : > { %s3534_s11 = smov (%p43_p8, %s3532_s11), 0  ;;  %p2846_p9 = por %p123_p7, %p56_p2 }
  0x23   : > { %3476 = sst [smem:[#allocation26_spill]] %s2840_s17  ;;  %s166_s5 = smul.u32 %s3530_s10, %s3526_s9 }
  0x24   : > { %3477 = sst [smem:[#allocation27_spill]] %s3534_s11  ;;  %s45_s29 = ssub.s32 %s2680_s7, %s3534_s11 }
  0x25   : > { %s172_s2 = sadd.s32 1, %s2632_s20  ;;  %p46_p10 = scmp.eq.s32.totalorder %s45_s29, 0 }
  0x26   : > { %s168_s27 = ssub.s32 %s165_s16, %s166_s5  ;;  %p2196_p12 = scmp.lt.s32.totalorder %s2684_s8, 8 }
  0x27   : > { %s169_s28 = sor.u32 %s168_s27, %s45_s29  ;;  %s226_s6 = sand.u32 1, %s2684_s8  }
  0x28   : > { %s2856_s15 = scalar_select %p46_p10, %s2656_s26, %s48_s12  }
  0x29   : > { %p170_p11 = scmp.eq.s32.totalorder %s169_s28, 0  ;;  %s228_s17 = sand.u32 1, %s2656_s26  }
  0x2a   : > { %3479 = sst [smem:[#allocation28_spill]] %s2856_s15  ;;  %s1641_s10 = sshll.u32 %s228_s17, 4 }
  0x2b   : > { %s2862_s4 = scalar_select %p170_p11, %s2632_s20, %s172_s2  }
  0x2c   : > { %s2053_s11 = sshll.u32 %s2680_s7, 4  ;;  %s3481_s0 = sld [smem:[#allocation30_spill]] }
  0x2d   : > { %3480 = sst [smem:[#allocation29_spill]] %s2862_s4  ;;  %s230_s27 = scalar_lea.vmem [#allocation6], %s1641_s10 }
  0x2e   : > { %s239_s29 = sshll.u32 %s230_s27, 4  ;;  %p2182_p13 = pnand %p2196_p12, %p2827_p5  ;;  %s240_s29 = int_to_ptr.vmem [resolvable:$true] %s239_s29 }
  0x2f   : > { %p2876_p0 = pnand %p2196_p12, %p2846_p9  ;;  %s2880_s28 = scalar_lea.sflag [#allocation7], %s226_s6 }
  0x30   : > { %s2686_s9 = smov 128   ;;  %s2687_s10 = smov 8  }
  0x31   : > { %s2054_s14 = smul.u32 40, %s2672_s30  ;;  %s3483_s3 = sld [smem:[#allocation33_spill]] }
  0x32   : > { %s236_s16 = scalar_lea.hbm %s3481_s0, %s2053_s11  ;;  %s251_s11 = sand.u32 1, %s2644_s23  }
  0x33   : > { %s237_s1 = sshll.u32 %s236_s16, 4  ;;  %s2159_s12 = smul.u32 640, %s251_s11  ;;  %s238_s1 = int_to_ptr.hbm [resolvable:$true] %s237_s1 }
  0x34   : > { %2184 = dma.hbm_to_vmem [thread:$0]  (!%p2182_p13), %s238_s1, 256, %s240_s29, %s2880_s28, %s2686_s9, %s2686_s9, %s2687_s10  }
  0x35   : > { %s253_s5 = scalar_lea.vmem [#allocation11], %s2159_s12  ;;  %s2688_s1 = smov 1280  }
  0x36   : > { %s261_s16 = sshll.u32 %s253_s5, 4  ;;  %s2689_s29 = smov 640   ;;  %s262_s16 = int_to_ptr.vmem [resolvable:$true] %s261_s16 }
  0x37   : > { %s258_s6 = scalar_lea.hbm %s3483_s3, %s2054_s14  ;;  %s2690_s9 = smov 40  }
  0x38   : > { %s259_s27 = sshll.u32 %s258_s6, 4  ;;  %s2894_s10 = sadd.s32 4294967295, %s2684_s8   ;;  %s260_s27 = int_to_ptr.hbm [resolvable:$true] %s259_s27 }
  0x39   : > { %2187 = dma.hbm_to_vmem [thread:$0]  (!%p2876_p0), %s260_s27, 10240, %s262_s16, %s2880_s28, %s2688_s1, %s2689_s29, %s2690_s9  }
  0x3a   : > { %s1637_s12 = sadd.s32 4294967294, %s2684_s8   ;;  %p62_p1 = scmp.eq.s32.totalorder %s2894_s10, 0 }
  0x3b   : > { %p129_p2 = scmp.ne.s32.totalorder %s2640_s22, %s2636_s21  ;;  %p182_p4 = scmp.ne.s32.totalorder %s2632_s20, %s2628_s19 }
  0x3c   : > { %p2907_p5 = por %p62_p1, %p61_p3  ;;  %p183_p6 = scmp.eq.s32.totalorder %s2894_s10, 7 }
  0x3d   : > { %p2914_p7 = por %p129_p2, %p62_p1  ;;  %p188_p8 = scmp.ne.s32.totalorder %s2628_s19, %s2624_s18 }
  0x3e   : > { %p2920_p9 = por %p183_p6, %p182_p4  ;;  %p189_p10 = scmp.eq.s32.totalorder %s1637_s12, 7 }
  0x3f   : > { %p1638_p11 = scmp.ge.s32.totalorder %s2684_s8, 1  ;;  %p196_p3 = scmp.lt.s32.totalorder %s2684_s8, 9 }
  0x40   : > { %p2926_p12 = por %p189_p10, %p188_p8  ;;  %s3489_s16 = sld [smem:[#allocation31_spill]] }
  0x41   : > { %p2930_p13 = pnand %p1638_p11, %p196_p3  ;;  %s2691_s1 = smov [#allocation9]  }
  0x42   : > { %s209_s29 = sshll.u32 %s2691_s1, 4  ;;  %s2160_s9 = smul.u32 10, %s251_s11  ;;  %s210_s29 = int_to_ptr.vmem [resolvable:$true] %s209_s29 }
  0x43   : > { %p2177_p2 = pneg %p2930_p13  ;;  %s276_s12 = smul.u32 10, %s2672_s30 }
  0x44   : > { %s2692_s0 = smov 64   ;;  %s2693_s3 = smov 4  }
  0x45   : > { %p2178_p4 = pnand %p2177_p2, %p62_p1  ;;  %s3490_s5 = sld [smem:[#allocation34_spill]] }
  0x46   : > { %s207_s27 = sshll.u32 %s3489_s16, 4  ;;  %s275_s26 = scalar_lea.vmem [#allocation12], %s2160_s9  ;;  %s208_s27 = int_to_ptr.hbm [resolvable:$true] %s207_s27 }
  0x47   : > { %2180 = dma.hbm_to_vmem [thread:$0]  (!%p2178_p4), %s208_s27, 2048, %s210_s29, [#allocation10], %s2692_s0, %s2692_s0, %s2693_s3  }
  0x48   : > { %s283_s4 = sshll.u32 %s275_s26, 4  ;;  %s294_s11 = sand.u32 (!%p2930_p13), 1, %s2894_s10   ;;  %s284_s4 = int_to_ptr.vmem [resolvable:$true] %s283_s4 }
  0x49   : > { %292 = sbr.rel (%p2930_p13) target bundleno = 1123 (0x463), region = 40  ;;  %s296_s1 = sand.u32 (!%p2930_p13), 1, %s2652_s25  }
  0x4a   : > { %s1647_s0 = sshll.u32 (!%p2930_p13), %s296_s1, 4  ;;  %s295_s3 = scalar_lea.sflag (!%p2930_p13), [#allocation7], %s294_s11 }
  0x4b   : > { %s279_s16 = scalar_lea.hbm %s3490_s5, %s276_s12  ;;  %s2954_s27 = scalar_lea.vmem (!%p2930_p13), [#allocation6], %s1647_s0 }
  0x4c   : > { %s281_s15 = sshll.u32 %s279_s16, 4  ;;  %s282_s15 = int_to_ptr.hbm [resolvable:$true] %s281_s15 }
  0x4d   : > { %2190 = dma.hbm_to_vmem [thread:$0]  (!%p2876_p0), %s282_s15, 160, %s284_s4, %s2880_s28  }
  0x4e   : > { %2607 = dma.done.wait (%p2907_p5), %s295_s3, 256  }
  0x4f   : > { %2609 = vsyncadd (%p2907_p5), %s295_s3, 4294967040 }
  0x50   : > { %2611 = dma.done.wait (%p62_p1), [#allocation10], 2048  }
  0x51   : > { %2613 = vsyncadd (%p62_p1), [#allocation10], 4294965248  ;;  %s311_s4 = sand.u32 1, %s2640_s22  }
  0x52   : > { %s2161_s26 = smul.u32 640, %s311_s4 }
  0x54   : > { %s2965_s7 = scalar_lea.vmem [#allocation11], %s2161_s26 }
  0x55   : > { %2615 = dma.done.wait (%p2914_p7), %s295_s3, 10400  }
  0x56   : > { %2617 = vsyncadd (%p2914_p7), %s295_s3, 4294956896  ;;  %s3491_s15 = sld [smem:[#allocation20_spill]]  ;;  %s2971_s28 = smul.u32 10, %s311_s4 }
  0x57   : > { %s3492_s2 = sld [smem:[#allocation19_spill]]  ;;  %s358_s10 = sand.u32 1, %s2628_s19  }
  0x58   : > { %s2163_s14 = smul.u32 160, %s358_s10  ;;  %s323_s24 = scalar_lea.vmem [#allocation12], %s2971_s28 }
  0x5a   : > { %s2981_s29 = scalar_lea.vmem [#allocation13], %s2163_s14 }
  0x5c   : > { %p367_p0 = scmp.eq.s32.totalorder %s3491_s15, 0 }
  0x5d   : > { %p368_p1 = scmp.eq.s32.totalorder %s3492_s2, 0 }
  0x5f   : > { %p369_p5 = pnand %p368_p1, %p367_p0 }
  0x60   : > { %s3493_s12 = sld [smem:[#allocation32_spill]] (!%p369_p5) }
  0x61   : > { %372 = sbr.rel (%p369_p5) target bundleno = 277 (0x115), region = 60 }
  0x66   : > { %v2064_v0 = vld [vmem:[#allocation9 + $0x38] sm:$0xff]  ;;  %v2063_v2 = vld [vmem:[#allocation9 + $0x30] sm:$0xff]  ;;  %v2062_v4 = vld [vmem:[#allocation9 + $0x28] sm:$0xff]  ;;  %vm551_vm0 = vcmask 7168   ;;  %v2694_v22 = vmov -inf   ;;  %v2695_v23 = vmov 0.0  }
  0x67   : > { %v2072_v1 = vld [vmem:[#allocation9 + $0x78] sm:$0xff]  ;;  %517 = vmatpush.bf16.msra.mxu0 %v2064_v0  ;;  %v2071_v3 = vld [vmem:[#allocation9 + $0x70] sm:$0xff]  ;;  %v2070_v5 = vld [vmem:[#allocation9 + $0x68] sm:$0xff]  ;;  %552 = vst.msk [vmem:[#allocation3] sm:$0xff] %vm551_vm0, %v2694_v22 }
  0x68   : > { %531 = vmatpush.bf16.msra.mxu1 %v2072_v1  ;;  %v2061_v6 = vld [vmem:[#allocation9 + $0x20] sm:$0xff]  ;;  %v2060_v8 = vld [vmem:[#allocation9 + $0x18] sm:$0xff]  ;;  %v2059_v10 = vld [vmem:[#allocation9 + $0x10] sm:$0xff]  ;;  %553 = vst.msk [vmem:[#allocation3 + $0x8] sm:$0xff] %vm551_vm0, %v2694_v22 }
  0x69   : > { %v2069_v7 = vld [vmem:[#allocation9 + $0x60] sm:$0xff]  ;;  %v2068_v9 = vld [vmem:[#allocation9 + $0x58] sm:$0xff]  ;;  %v2067_v11 = vld [vmem:[#allocation9 + $0x50] sm:$0xff]  ;;  %554 = vst.msk [vmem:[#allocation4] sm:$0xff] %vm551_vm0, %v2695_v23 }
  0x6a   : > { %v2058_v12 = vld [vmem:[#allocation9 + $0x8] sm:$0xff]  ;;  %v2057_v14 = vld [vmem:[#allocation9] sm:$0xff]  ;;  %555 = vst.msk [vmem:[#allocation4 + $0x8] sm:$0xff] %vm551_vm0, %v2695_v23 }
  0x6b   : > { %518 = vmatpush.bf16.msra.mxu0 %v2063_v2  ;;  %v2066_v13 = vld [vmem:[#allocation9 + $0x48] sm:$0xff]  ;;  %v2065_v15 = vld [vmem:[#allocation9 + $0x40] sm:$0xff] }
  0x6c   : > { %532 = vmatpush.bf16.msra.mxu1 %v2071_v3  ;;  %v1651_v16 = vld [vmem:[%s2954_s27] sm:$0xf]  ;;  %v2056_v17 = vld [vmem:[%s2954_s27 + $0x4] sm:$0xf0]  ;;  %v2055_v18 = vld [vmem:[%s2954_s27 + $0x4] sm:$0xf] }
  0x6d   : > { %v1653_v19 = vld [vmem:[%s2954_s27 + $0x8] sm:$0xf0]  ;;  %v1652_v20 = vor.u32 %v2056_v17, %v1651_v16  ;;  %v2342_v26 = vld [vmem:[%s3493_s12] ss:$0 sm:$0xff] }
  0x6e   : > { %v1656_v21 = vor.u32 %v2055_v18, %v1653_v19 }
  0x6f   : > { %519 = vmatpush.bf16.msra.mxu0 %v2062_v4 }
  0x70   : > { %533 = vmatpush.bf16.msra.mxu1 %v2070_v5 }
  0x73   : > { %520 = vmatpush.bf16.msra.mxu0 %v2061_v6 }
  0x74   : > { %534 = vmatpush.bf16.msra.mxu1 %v2069_v7 }
  0x77   : > { %521 = vmatpush.bf16.msra.mxu0 %v2060_v8 }
  0x78   : > { %535 = vmatpush.bf16.msra.mxu1 %v2068_v9 }
  0x7b   : > { %522 = vmatpush.bf16.msra.mxu0 %v2059_v10 }
  0x7c   : > { %536 = vmatpush.bf16.msra.mxu1 %v2067_v11 }
  0x7f   : > { %523 = vmatpush.bf16.msra.mxu0 %v2058_v12 }
  0x80   : > { %537 = vmatpush.bf16.msra.mxu1 %v2066_v13 }
  0x83   : > { %524 = vmatpush.bf16.msra.mxu0 %v2057_v14 }
  0x84   : > { %538 = vmatpush.bf16.msra.mxu1 %v2065_v15 }
  0x86   : > { %525 = vmatmul.bf16.vlgmr.msra.gmra.mxu0 %v1652_v20 }
  0x87   : > { %539 = vmatmul.bf16.vlgmr.msra.gmra.mxu1 %v1656_v21 }
 0x103   : > { %v526_v24 = vpop.f32.mrf.mxu0 }
 0x104   : > { %v540_v25 = vpop.f32.mrf.mxu1  ;;  %v527_v27 = vadd.f32 %v2342_v26, %v526_v24 }
 0x106   : > { %v541_v29 = vadd.f32 %v540_v25, %v527_v27 }
 0x108   : > { %v545_v33 = vmax.f32 %v541_v29, 0.0 }
 0x10b   : > { %v528_v28 = vpop.f32.mrf.mxu0 }
 0x10c   : > { %v529_v30 = vadd.f32 %v2342_v26, %v528_v28  ;;  %v542_v31 = vpop.f32.mrf.mxu1 }
 0x10e   : > { %v543_v32 = vadd.f32 %v542_v31, %v529_v30 }
 0x110   : > { %v546_v34 = vmax.f32 %v543_v32, 0.0 }
 0x112   : > { %v2157_v35 = vpack.c.bf16 %v546_v34, %v545_v33 }
 0x114   : > { %2158 = vst [vmem:[#allocation2] sm:$0xff] %v2157_v35  }
 0x115 PF: > { %v2007_v36 = vld [vmem:[%s2965_s7 + $0x230] sm:$0xf]  ;;  %v2149_v37 = vld [vmem:[%s2965_s7 + $0x254] sm:$0xf0]  ;;  %v2144_v38 = vld [vmem:[%s2965_s7 + $0x234] sm:$0xf] }
 0x116   : > { %v2008_v39 = vor.u32 %v2149_v37, %v2007_v36  ;;  %v2009_v40 = vld [vmem:[%s2965_s7 + $0x258] sm:$0xf0]  ;;  %v1967_v41 = vld [vmem:[%s2965_s7 + $0x1e0] sm:$0xf]  ;;  %v2139_v42 = vld [vmem:[%s2965_s7 + $0x204] sm:$0xf0] }
 0x117   : > { %v2012_v43 = vor.u32 %v2144_v38, %v2009_v40  ;;  %v2134_v44 = vld [vmem:[%s2965_s7 + $0x1e4] sm:$0xf]  ;;  %v1969_v45 = vld [vmem:[%s2965_s7 + $0x208] sm:$0xf0]  ;;  %v1968_v46 = vor.u32 %v2139_v42, %v1967_v41  ;;  %v1927_v48 = vld [vmem:[%s2965_s7 + $0x190] sm:$0xf] }
 0x118   : > { %1068 = vmatpush.bf16.msra.mxu0 %v2008_v39  ;;  %v1972_v47 = vor.u32 %v2134_v44, %v1969_v45  ;;  %v2129_v49 = vld [vmem:[%s2965_s7 + $0x1b4] sm:$0xf0]  ;;  %v2124_v50 = vld [vmem:[%s2965_s7 + $0x194] sm:$0xf]  ;;  %v1929_v51 = vld [vmem:[%s2965_s7 + $0x1b8] sm:$0xf0] }
 0x119   : > { %1082 = vmatpush.bf16.msra.mxu1 %v2012_v43  ;;  %v2015_v52 = vld [vmem:[%s2965_s7 + $0x238] sm:$0xf]  ;;  %v2150_v53 = vld [vmem:[%s2965_s7 + $0x25c] sm:$0xf0]  ;;  %v2145_v55 = vld [vmem:[%s2965_s7 + $0x23c] sm:$0xf]  ;;  %v1928_v57 = vor.u32 %v2129_v49, %v1927_v48  ;;  %v1932_v61 = vor.u32 %v2124_v50, %v1929_v51 }
 0x11a   : > { %v2016_v54 = vor.u32 %v2150_v53, %v2015_v52  ;;  %v2017_v56 = vld [vmem:[%s2965_s7 + $0x260] sm:$0xf0]  ;;  %v1887_v58 = vld [vmem:[%s2965_s7 + $0x140] sm:$0xf]  ;;  %v2119_v59 = vld [vmem:[%s2965_s7 + $0x164] sm:$0xf0] }
 0x11b   : > { %v2020_v60 = vor.u32 %v2145_v55, %v2017_v56  ;;  %v1975_v62 = vld [vmem:[%s2965_s7 + $0x1e8] sm:$0xf]  ;;  %v2140_v63 = vld [vmem:[%s2965_s7 + $0x20c] sm:$0xf0]  ;;  %v2135_v0 = vld [vmem:[%s2965_s7 + $0x1ec] sm:$0xf]  ;;  %v1888_v7 = vor.u32 %v2119_v59, %v1887_v58 }
 0x11c   : > { %1069 = vmatpush.bf16.msra.mxu0 %v1968_v46  ;;  %1096 = vmatpush.bf16.msra.mxu2 %v2016_v54  ;;  %v2114_v1 = vld [vmem:[%s2965_s7 + $0x144] sm:$0xf]  ;;  %v1889_v2 = vld [vmem:[%s2965_s7 + $0x168] sm:$0xf0]  ;;  %v1976_v3 = vor.u32 %v2140_v63, %v1975_v62  ;;  %v1977_v4 = vld [vmem:[%s2965_s7 + $0x210] sm:$0xf0] }
 0x11d   : > { %1083 = vmatpush.bf16.msra.mxu1 %v1972_v47  ;;  %1110 = vmatpush.bf16.msra.mxu3 %v2020_v60  ;;  %v1980_v5 = vor.u32 %v2135_v0, %v1977_v4  ;;  %v1935_v6 = vld [vmem:[%s2965_s7 + $0x198] sm:$0xf]  ;;  %v2130_v8 = vld [vmem:[%s2965_s7 + $0x1bc] sm:$0xf0]  ;;  %v2125_v9 = vld [vmem:[%s2965_s7 + $0x19c] sm:$0xf]  ;;  %v1892_v11 = vor.u32 %v2114_v1, %v1889_v2 }
 0x11e   : > { %v1937_v10 = vld [vmem:[%s2965_s7 + $0x1c0] sm:$0xf0]  ;;  %v1847_v12 = vld [vmem:[%s2965_s7 + $0xf0] sm:$0xf]  ;;  %v2109_v13 = vld [vmem:[%s2965_s7 + $0x114] sm:$0xf0]  ;;  %v1936_v15 = vor.u32 %v2130_v8, %v1935_v6 }
 0x11f   : > { %v2104_v14 = vld [vmem:[%s2965_s7 + $0xf4] sm:$0xf]  ;;  %v1849_v16 = vld [vmem:[%s2965_s7 + $0x118] sm:$0xf0]  ;;  %v1940_v17 = vor.u32 %v2125_v9, %v1937_v10  ;;  %v1895_v18 = vld [vmem:[%s2965_s7 + $0x148] sm:$0xf]  ;;  %v1848_v22 = vor.u32 %v2109_v13, %v1847_v12 }
 0x120   : > { %1070 = vmatpush.bf16.msra.mxu0 %v1928_v57  ;;  %1097 = vmatpush.bf16.msra.mxu2 %v1976_v3  ;;  %v2120_v19 = vld [vmem:[%s2965_s7 + $0x16c] sm:$0xf0]  ;;  %v2115_v20 = vld [vmem:[%s2965_s7 + $0x14c] sm:$0xf]  ;;  %v1897_v21 = vld [vmem:[%s2965_s7 + $0x170] sm:$0xf0]  ;;  %v1852_v23 = vor.u32 %v2104_v14, %v1849_v16 }
 0x121   : > { %1084 = vmatpush.bf16.msra.mxu1 %v1932_v61  ;;  %1111 = vmatpush.bf16.msra.mxu3 %v1980_v5  ;;  %v1807_v24 = vld [vmem:[%s2965_s7 + $0xa0] sm:$0xf]  ;;  %v2099_v25 = vld [vmem:[%s2965_s7 + $0xc4] sm:$0xf0]  ;;  %v2094_v26 = vld [vmem:[%s2965_s7 + $0xa4] sm:$0xf]  ;;  %v1896_v27 = vor.u32 %v2120_v19, %v1895_v18  ;;  %v1900_v29 = vor.u32 %v2115_v20, %v1897_v21 }
 0x122   : > { %v1809_v28 = vld [vmem:[%s2965_s7 + $0xc8] sm:$0xf0]  ;;  %v1855_v30 = vld [vmem:[%s2965_s7 + $0xf8] sm:$0xf]  ;;  %v2110_v31 = vld [vmem:[%s2965_s7 + $0x11c] sm:$0xf0]  ;;  %v1808_v34 = vor.u32 %v2099_v25, %v1807_v24 }
 0x123   : > { %v2105_v32 = vld [vmem:[%s2965_s7 + $0xfc] sm:$0xf]  ;;  %v1857_v33 = vld [vmem:[%s2965_s7 + $0x120] sm:$0xf0]  ;;  %v1812_v35 = vor.u32 %v2094_v26, %v1809_v28  ;;  %v1767_v36 = vld [vmem:[%s2965_s7 + $0x50] sm:$0xf]  ;;  %v1856_v39 = vor.u32 %v2110_v31, %v1855_v30 }
 0x124   : > { %1071 = vmatpush.bf16.msra.mxu0 %v1888_v7  ;;  %1098 = vmatpush.bf16.msra.mxu2 %v1936_v15  ;;  %v2089_v37 = vld [vmem:[%s2965_s7 + $0x74] sm:$0xf0]  ;;  %v2084_v38 = vld [vmem:[%s2965_s7 + $0x54] sm:$0xf]  ;;  %v1769_v40 = vld [vmem:[%s2965_s7 + $0x78] sm:$0xf0]  ;;  %v1860_v41 = vor.u32 %v2105_v32, %v1857_v33 }
 0x125   : > { %1085 = vmatpush.bf16.msra.mxu1 %v1892_v11  ;;  %1112 = vmatpush.bf16.msra.mxu3 %v1940_v17  ;;  %v1815_v42 = vld [vmem:[%s2965_s7 + $0xa8] sm:$0xf]  ;;  %v2100_v43 = vld [vmem:[%s2965_s7 + $0xcc] sm:$0xf0]  ;;  %v2095_v44 = vld [vmem:[%s2965_s7 + $0xac] sm:$0xf]  ;;  %v1768_v46 = vor.u32 %v2089_v37, %v1767_v36  ;;  %v1772_v48 = vor.u32 %v2084_v38, %v1769_v40 }
 0x126   : > { %v1817_v45 = vld [vmem:[%s2965_s7 + $0xd0] sm:$0xf0]  ;;  %v1727_v47 = vld [vmem:[%s2965_s7] sm:$0xf]  ;;  %v2079_v49 = vld [vmem:[%s2965_s7 + $0x24] sm:$0xf0]  ;;  %v1816_v52 = vor.u32 %v2100_v43, %v1815_v42 }
 0x127   : > { %v2074_v50 = vld [vmem:[%s2965_s7 + $0x4] sm:$0xf]  ;;  %v1729_v51 = vld [vmem:[%s2965_s7 + $0x28] sm:$0xf0]  ;;  %v2023_v53 = vld [vmem:[%s2965_s7 + $0x240] sm:$0xf]  ;;  %v1820_v56 = vor.u32 %v2095_v44, %v1817_v45  ;;  %v1728_v60 = vor.u32 %v2079_v49, %v1727_v47 }
 0x128   : > { %1072 = vmatpush.bf16.msra.mxu0 %v1848_v22  ;;  %1099 = vmatpush.bf16.msra.mxu2 %v1896_v27  ;;  %v2151_v54 = vld [vmem:[%s2965_s7 + $0x264] sm:$0xf0]  ;;  %v2146_v55 = vld [vmem:[%s2965_s7 + $0x244] sm:$0xf]  ;;  %v2025_v57 = vld [vmem:[%s2965_s7 + $0x268] sm:$0xf0]  ;;  %v1732_v63 = vor.u32 %v2074_v50, %v1729_v51 }
 0x129   : > { %1086 = vmatpush.bf16.msra.mxu1 %v1852_v23  ;;  %1113 = vmatpush.bf16.msra.mxu3 %v1900_v29  ;;  %v1775_v58 = vld [vmem:[%s2965_s7 + $0x58] sm:$0xf]  ;;  %v2090_v59 = vld [vmem:[%s2965_s7 + $0x7c] sm:$0xf0]  ;;  %v2085_v61 = vld [vmem:[%s2965_s7 + $0x5c] sm:$0xf]  ;;  %v2024_v0 = vor.u32 %v2151_v54, %v2023_v53  ;;  %v2028_v3 = vor.u32 %v2146_v55, %v2025_v57 }
 0x12a   : > { %v1777_v62 = vld [vmem:[%s2965_s7 + $0x80] sm:$0xf0]  ;;  %v1983_v1 = vld [vmem:[%s2965_s7 + $0x1f0] sm:$0xf]  ;;  %v2141_v2 = vld [vmem:[%s2965_s7 + $0x214] sm:$0xf0]  ;;  %v1776_v6 = vor.u32 %v2090_v59, %v1775_v58 }
 0x12b   : > { %v2136_v4 = vld [vmem:[%s2965_s7 + $0x1f4] sm:$0xf]  ;;  %v1985_v5 = vld [vmem:[%s2965_s7 + $0x218] sm:$0xf0]  ;;  %v1735_v7 = vld [vmem:[%s2965_s7 + $0x8] sm:$0xf]  ;;  %v1780_v8 = vor.u32 %v2085_v61, %v1777_v62  ;;  %v1984_v15 = vor.u32 %v2141_v2, %v1983_v1 }
 0x12c   : > { %1073 = vmatpush.bf16.msra.mxu0 %v1808_v34  ;;  %1100 = vmatpush.bf16.msra.mxu2 %v1856_v39  ;;  %v2080_v9 = vld [vmem:[%s2965_s7 + $0x2c] sm:$0xf0]  ;;  %v2075_v10 = vld [vmem:[%s2965_s7 + $0xc] sm:$0xf]  ;;  %v1737_v12 = vld [vmem:[%s2965_s7 + $0x30] sm:$0xf0]  ;;  %v1988_v18 = vor.u32 %v2136_v4, %v1985_v5 }
 0x12d   : > { %1087 = vmatpush.bf16.msra.mxu1 %v1812_v35  ;;  %1114 = vmatpush.bf16.msra.mxu3 %v1860_v41  ;;  %v3061_v11 = vld [vmem:[#allocation2] sm:$0xff]  ;;  %v2152_v14 = vld [vmem:[%s2965_s7 + $0x26c] sm:$0xf0]  ;;  %v2033_v17 = vld [vmem:[%s2965_s7 + $0x270] sm:$0xf0]  ;;  %v1736_v21 = vor.u32 %v2080_v9, %v1735_v7  ;;  %v1740_v24 = vor.u32 %v2075_v10, %v1737_v12  ;;  %s3494_s6 = sld [smem:[#allocation19_spill]] }
 0x12e   : > { %v2031_v13 = vld [vmem:[%s2965_s7 + $0x248] sm:$0xf]  ;;  %v2147_v16 = vld [vmem:[%s2965_s7 + $0x24c] sm:$0xf]  ;;  %v1943_v19 = vld [vmem:[%s2965_s7 + $0x1a0] sm:$0xf] }
 0x12f   : > { %v2131_v20 = vld [vmem:[%s2965_s7 + $0x1c4] sm:$0xf0]  ;;  %v2126_v22 = vld [vmem:[%s2965_s7 + $0x1a4] sm:$0xf]  ;;  %v1945_v23 = vld [vmem:[%s2965_s7 + $0x1c8] sm:$0xf0]  ;;  %v2032_v25 = vor.u32 %v2152_v14, %v2031_v13  ;;  %v2036_v26 = vor.u32 %v2147_v16, %v2033_v17 }
 0x130   : > { %1074 = vmatpush.bf16.msra.mxu0 %v1768_v46  ;;  %1101 = vmatpush.bf16.msra.mxu2 %v1816_v52  ;;  %v1991_v27 = vld [vmem:[%s2965_s7 + $0x1f8] sm:$0xf]  ;;  %v2142_v28 = vld [vmem:[%s2965_s7 + $0x21c] sm:$0xf0]  ;;  %v1944_v29 = vor.u32 %v2131_v20, %v1943_v19  ;;  %v2137_v30 = vld [vmem:[%s2965_s7 + $0x1fc] sm:$0xf]  ;;  %v1948_v32 = vor.u32 %v2126_v22, %v1945_v23 }
 0x131   : > { %1088 = vmatpush.bf16.msra.mxu1 %v1772_v48  ;;  %1115 = vmatpush.bf16.msra.mxu3 %v1820_v56  ;;  %v1993_v31 = vld [vmem:[%s2965_s7 + $0x220] sm:$0xf0]  ;;  %v1903_v33 = vld [vmem:[%s2965_s7 + $0x150] sm:$0xf]  ;;  %v2121_v34 = vld [vmem:[%s2965_s7 + $0x174] sm:$0xf0]  ;;  %v1992_v37 = vor.u32 %v2142_v28, %v1991_v27 }
 0x132   : > { %v2116_v35 = vld [vmem:[%s2965_s7 + $0x154] sm:$0xf]  ;;  %v1905_v36 = vld [vmem:[%s2965_s7 + $0x178] sm:$0xf0]  ;;  %v1996_v38 = vor.u32 %v2137_v30, %v1993_v31  ;;  %v1951_v39 = vld [vmem:[%s2965_s7 + $0x1a8] sm:$0xf]  ;;  %v1904_v41 = vor.u32 %v2121_v34, %v1903_v33 }
 0x133   : > { %v2132_v40 = vld [vmem:[%s2965_s7 + $0x1cc] sm:$0xf0]  ;;  %v2127_v42 = vld [vmem:[%s2965_s7 + $0x1ac] sm:$0xf]  ;;  %v1953_v43 = vld [vmem:[%s2965_s7 + $0x1d0] sm:$0xf0]  ;;  %v1908_v44 = vor.u32 %v2116_v35, %v1905_v36 }
 0x134   : > { %1075 = vmatpush.bf16.msra.mxu0 %v1728_v60  ;;  %1102 = vmatpush.bf16.msra.mxu2 %v1776_v6  ;;  %v1863_v45 = vld [vmem:[%s2965_s7 + $0x100] sm:$0xf]  ;;  %v2111_v46 = vld [vmem:[%s2965_s7 + $0x124] sm:$0xf0]  ;;  %v2106_v47 = vld [vmem:[%s2965_s7 + $0x104] sm:$0xf]  ;;  %v1952_v49 = vor.u32 %v2132_v40, %v1951_v39  ;;  %v1956_v50 = vor.u32 %v2127_v42, %v1953_v43 }
 0x135   : > { %1089 = vmatpush.bf16.msra.mxu1 %v1732_v63  ;;  %1116 = vmatpush.bf16.msra.mxu3 %v1780_v8  ;;  %v1865_v48 = vld [vmem:[%s2965_s7 + $0x128] sm:$0xf0]  ;;  %v1911_v51 = vld [vmem:[%s2965_s7 + $0x158] sm:$0xf]  ;;  %v2122_v52 = vld [vmem:[%s2965_s7 + $0x17c] sm:$0xf0]  ;;  %v1864_v53 = vor.u32 %v2111_v46, %v1863_v45 }
 0x136   : > { %v2117_v54 = vld [vmem:[%s2965_s7 + $0x15c] sm:$0xf]  ;;  %v1913_v55 = vld [vmem:[%s2965_s7 + $0x180] sm:$0xf0]  ;;  %v1868_v56 = vor.u32 %v2106_v47, %v1865_v48  ;;  %v1823_v57 = vld [vmem:[%s2965_s7 + $0xb0] sm:$0xf]  ;;  %v1912_v61 = vor.u32 %v2122_v52, %v1911_v51 }
 0x137   : > { %1076 = vmatmul.bf16.vlgmr.msra.gmra.mxu0 %v3061_v11  ;;  %v2101_v58 = vld [vmem:[%s2965_s7 + $0xd4] sm:$0xf0]  ;;  %v2096_v59 = vld [vmem:[%s2965_s7 + $0xb4] sm:$0xf]  ;;  %v1825_v60 = vld [vmem:[%s2965_s7 + $0xd8] sm:$0xf0]  ;;  %v1916_v62 = vor.u32 %v2117_v54, %v1913_v55 }
 0x138   : > { %1124 = vmatpush.bf16.msrb.mxu0 %v2024_v0  ;;  %1090 = vmatmul.bf16.vlgmr.msra.gmra.mxu1 %v3061_v11  ;;  %v1871_v63 = vld [vmem:[%s2965_s7 + $0x108] sm:$0xf]  ;;  %v2112_v0 = vld [vmem:[%s2965_s7 + $0x12c] sm:$0xf0]  ;;  %v1824_v1 = vor.u32 %v2101_v58, %v1823_v57  ;;  %v2107_v2 = vld [vmem:[%s2965_s7 + $0x10c] sm:$0xf]  ;;  %v1828_v4 = vor.u32 %v2096_v59, %v1825_v60 }
 0x139   : > { %1138 = vmatpush.bf16.msrb.mxu1 %v2028_v3  ;;  %1103 = vmatpush.bf16.msra.mxu2 %v1736_v21  ;;  %v1873_v3 = vld [vmem:[%s2965_s7 + $0x130] sm:$0xf0]  ;;  %v1783_v5 = vld [vmem:[%s2965_s7 + $0x60] sm:$0xf]  ;;  %v2091_v6 = vld [vmem:[%s2965_s7 + $0x84] sm:$0xf0]  ;;  %v1872_v9 = vor.u32 %v2112_v0, %v1871_v63 }
 0x13a   : > { %1117 = vmatpush.bf16.msra.mxu3 %v1740_v24  ;;  %v2086_v7 = vld [vmem:[%s2965_s7 + $0x64] sm:$0xf]  ;;  %v1785_v8 = vld [vmem:[%s2965_s7 + $0x88] sm:$0xf0]  ;;  %v1876_v10 = vor.u32 %v2107_v2, %v1873_v3  ;;  %v1831_v12 = vld [vmem:[%s2965_s7 + $0xb8] sm:$0xf]  ;;  %v1784_v14 = vor.u32 %v2091_v6, %v1783_v5 }
 0x13b   : > { %v2102_v13 = vld [vmem:[%s2965_s7 + $0xdc] sm:$0xf0]  ;;  %v2097_v16 = vld [vmem:[%s2965_s7 + $0xbc] sm:$0xf]  ;;  %v1833_v17 = vld [vmem:[%s2965_s7 + $0xe0] sm:$0xf0] }
 0x13c   : > { %1125 = vmatpush.bf16.msrb.mxu0 %v1984_v15  ;;  %1104 = vmatmul.bf16.vlgmr.msra.gmra.mxu2 %v3061_v11  ;;  %v1743_v15 = vld [vmem:[%s2965_s7 + $0x10] sm:$0xf]  ;;  %v2081_v19 = vld [vmem:[%s2965_s7 + $0x34] sm:$0xf0]  ;;  %v2076_v20 = vld [vmem:[%s2965_s7 + $0x14] sm:$0xf]  ;;  %v1836_v27 = vor.u32 %v2097_v16, %v1833_v17 }
 0x13d   : > { %1139 = vmatpush.bf16.msrb.mxu1 %v1988_v18  ;;  %1152 = vmatpush.bf16.msrb.mxu2 %v2032_v25  ;;  %v1788_v18 = vor.u32 %v2086_v7, %v1785_v8  ;;  %v1745_v21 = vld [vmem:[%s2965_s7 + $0x38] sm:$0xf0]  ;;  %v2039_v22 = vld [vmem:[%s2965_s7 + $0x250] sm:$0xf]  ;;  %v2153_v23 = vld [vmem:[%s2965_s7 + $0x274] sm:$0xf0]  ;;  %v1832_v25 = vor.u32 %v2102_v13, %v1831_v12  ;;  %v1744_v30 = vor.u32 %v2081_v19, %v1743_v15 }
 0x13e   : > { %1166 = vmatpush.bf16.msrb.mxu3 %v2036_v26  ;;  %v2148_v24 = vld [vmem:[%s2965_s7 + $0x254] sm:$0xf]  ;;  %v2041_v26 = vld [vmem:[%s2965_s7 + $0x278] sm:$0xf0]  ;;  %v1791_v28 = vld [vmem:[%s2965_s7 + $0x68] sm:$0xf]  ;;  %v1748_v33 = vor.u32 %v2076_v20, %v1745_v21  ;;  %v2040_v34 = vor.u32 %v2153_v23, %v2039_v22  ;;  %v1209_v23 = vlaneseq }
 0x13f   : > { %1118 = vmatmul.bf16.vlgmr.msra.gmra.mxu3 %v3061_v11  ;;  %v2087_v31 = vld [vmem:[%s2965_s7 + $0x6c] sm:$0xf]  ;;  %v2044_v35 = vor.u32 %v2148_v24, %v2041_v26  ;;  %v1999_v36 = vld [vmem:[%s2965_s7 + $0x200] sm:$0xf]  ;;  %v1751_v42 = vld [vmem:[%s2965_s7 + $0x18] sm:$0xf] }
 0x140   : > { %1126 = vmatpush.bf16.msrb.mxu0 %v1944_v29  ;;  %v2092_v29 = vld [vmem:[%s2965_s7 + $0x8c] sm:$0xf0]  ;;  %v2001_v40 = vld [vmem:[%s2965_s7 + $0x228] sm:$0xf0]  ;;  %v2082_v43 = vld [vmem:[%s2965_s7 + $0x3c] sm:$0xf0] }
 0x141   : > { %1140 = vmatpush.bf16.msrb.mxu1 %v1948_v32  ;;  %1153 = vmatpush.bf16.msrb.mxu2 %v1992_v37  ;;  %v1793_v32 = vld [vmem:[%s2965_s7 + $0x90] sm:$0xf0]  ;;  %v2143_v37 = vld [vmem:[%s2965_s7 + $0x224] sm:$0xf0]  ;;  %v1792_v39 = vor.u32 %v2092_v29, %v1791_v28  ;;  %v1753_v45 = vld [vmem:[%s2965_s7 + $0x40] sm:$0xf0] }
 0x142   : > { %1167 = vmatpush.bf16.msrb.mxu3 %v1996_v38  ;;  %v2138_v38 = vld [vmem:[%s2965_s7 + $0x204] sm:$0xf]  ;;  %v2000_v46 = vor.u32 %v2143_v37, %v1999_v36  ;;  %v1959_v48 = vld [vmem:[%s2965_s7 + $0x1b0] sm:$0xf]  ;;  %v2128_v51 = vld [vmem:[%s2965_s7 + $0x1b4] sm:$0xf] }
 0x143   : > { %v2004_v47 = vor.u32 %v2138_v38, %v2001_v40  ;;  %v1961_v52 = vld [vmem:[%s2965_s7 + $0x1d8] sm:$0xf0]  ;;  %v2123_v57 = vld [vmem:[%s2965_s7 + $0x184] sm:$0xf0]  ;;  %v2118_v58 = vld [vmem:[%s2965_s7 + $0x164] sm:$0xf] }
 0x144   : > { %1127 = vmatpush.bf16.msrb.mxu0 %v1904_v41  ;;  %v1796_v41 = vor.u32 %v2087_v31, %v1793_v32  ;;  %v1964_v55 = vor.u32 %v2128_v51, %v1961_v52  ;;  %v1921_v59 = vld [vmem:[%s2965_s7 + $0x188] sm:$0xf0]  ;;  %v2113_v63 = vld [vmem:[%s2965_s7 + $0x134] sm:$0xf0]  ;;  %v2108_v0 = vld [vmem:[%s2965_s7 + $0x114] sm:$0xf] }
 0x145   : > { %1141 = vmatpush.bf16.msrb.mxu1 %v1908_v44  ;;  %1154 = vmatpush.bf16.msrb.mxu2 %v1952_v49  ;;  %v2077_v44 = vld [vmem:[%s2965_s7 + $0x1c] sm:$0xf]  ;;  %v2133_v49 = vld [vmem:[%s2965_s7 + $0x1d4] sm:$0xf0]  ;;  %v2103_v5 = vld [vmem:[%s2965_s7 + $0xe4] sm:$0xf0] }
 0x146   : > { %1168 = vmatpush.bf16.msrb.mxu3 %v1956_v50  ;;  %v1752_v50 = vor.u32 %v2082_v43, %v1751_v42  ;;  %v1960_v54 = vor.u32 %v2133_v49, %v1959_v48  ;;  %v2098_v6 = vld [vmem:[%s2965_s7 + $0xc4] sm:$0xf]  ;;  %v1841_v7 = vld [vmem:[%s2965_s7 + $0xe8] sm:$0xf0]  ;;  %v2093_v12 = vld [vmem:[%s2965_s7 + $0x94] sm:$0xf0] }
 0x147   : > { %v2088_v13 = vld [vmem:[%s2965_s7 + $0x74] sm:$0xf]  ;;  %v1759_v17 = vld [vmem:[%s2965_s7 + $0x20] sm:$0xf]  ;;  %v2078_v19 = vld [vmem:[%s2965_s7 + $0x24] sm:$0xf] }
 0x148   : > { %1128 = vmatpush.bf16.msrb.mxu0 %v1864_v53  ;;  %v1756_v53 = vor.u32 %v2077_v44, %v1753_v45  ;;  %v1761_v20 = vld [vmem:[%s2965_s7 + $0x48] sm:$0xf0]  ;;  %s1208_s5 = smul.u32 1280, %s3494_s6  ;;  %v3163_v24 = vand.u32 127, %v1209_v23  ;;  %s3495_s16 = sld [smem:[#allocation20_spill]] }
 0x149   : > { %1142 = vmatpush.bf16.msrb.mxu1 %v1868_v56  ;;  %1155 = vmatpush.bf16.msrb.mxu2 %v1912_v61  ;;  %v1919_v56 = vld [vmem:[%s2965_s7 + $0x160] sm:$0xf]  ;;  %v1924_v61 = vor.u32 %v2118_v58, %v1921_v59  ;;  %v1764_v22 = vor.u32 %v2078_v19, %v1761_v20 }
 0x14a   : > { %1169 = vmatpush.bf16.msrb.mxu3 %v1916_v62  ;;  %v1920_v60 = vor.u32 %v2123_v57, %v1919_v56  ;;  %v1879_v62 = vld [vmem:[%s2965_s7 + $0x110] sm:$0xf]  ;;  %v1211_v26 = vadd.s32 128, %v3163_v24  ;;  %v1212_v37 = vadd.s32 256, %v3163_v24  ;;  %v1213_v38 = vadd.s32 384, %v3163_v24 }
 0x14b   : > { %v1880_v2 = vor.u32 %v2113_v63, %v1879_v62  ;;  %v1214_v56 = vadd.s32 512, %v3163_v24  ;;  %v1215_v59 = vadd.s32 640, %v3163_v24 }
 0x14c   : > { %1129 = vmatpush.bf16.msrb.mxu0 %v1824_v1  ;;  %v1881_v1 = vld [vmem:[%s2965_s7 + $0x138] sm:$0xf0] }
 0x14d   : > { %1143 = vmatpush.bf16.msrb.mxu1 %v1828_v4  ;;  %1156 = vmatpush.bf16.msrb.mxu2 %v1872_v9  ;;  %v1884_v3 = vor.u32 %v2108_v0, %v1881_v1  ;;  %v1839_v4 = vld [vmem:[%s2965_s7 + $0xc0] sm:$0xf]  ;;  %v1844_v9 = vor.u32 %v2098_v6, %v1841_v7 }
 0x14e   : > { %1170 = vmatpush.bf16.msrb.mxu3 %v1876_v10  ;;  %v1840_v8 = vor.u32 %v2103_v5, %v1839_v4  ;;  %v1799_v10 = vld [vmem:[%s2965_s7 + $0x70] sm:$0xf]  ;;  %p2045_p6 = scmp.ne.s32.totalorder %s3495_s16, 0 }
 0x14f   : > { %v1800_v15 = vor.u32 %v2093_v12, %v1799_v10  ;;  %v1217_v10 = vadd.s32 896, %v3163_v24 }
 0x150   : > { %1130 = vmatpush.bf16.msrb.mxu0 %v1784_v14  ;;  %v1801_v14 = vld [vmem:[%s2965_s7 + $0x98] sm:$0xf0] }
 0x151   : > { %1144 = vmatpush.bf16.msrb.mxu1 %v1788_v18  ;;  %1157 = vmatpush.bf16.msrb.mxu2 %v1832_v25  ;;  %v1804_v16 = vor.u32 %v2088_v13, %v1801_v14  ;;  %v2083_v18 = vld [vmem:[%s2965_s7 + $0x44] sm:$0xf0]  ;;  %v3165_v25 = vstv %s1208_s5 }
 0x152   : > { %1171 = vmatpush.bf16.msrb.mxu3 %v1836_v27  ;;  %v1760_v21 = vor.u32 %v2083_v18, %v1759_v17  ;;  %v3170_v27 = vld [vmem:[%s323_s24] sm:$0xff]  ;;  %v1221_v28 = vadd.s32 %v3165_v25, %v3163_v24  ;;  %v1223_v40 = vadd.s32 %v3165_v25, %v1212_v37  ;;  %v1224_v44 = vadd.s32 %v3165_v25, %v1213_v38  ;;  %v639_v38 = vld [vmem:[%s323_s24 + $0x8] sm:$0x3] }
 0x153   : > { %v642_v29 = vperm.slane %v3170_v27, 0  ;;  %v644_v43 = vperm.slane %v3170_v27, 2  ;;  %v1225_v63 = vadd.s32 %v3165_v25, %v1214_v56  ;;  %v646_v0 = vperm.slane %v3170_v27, 4 }
 0x154   : > { %1131 = vmatpush.bf16.msrb.mxu0 %v1744_v30  ;;  %v1222_v30 = vadd.s32 %v3165_v25, %v1211_v26  ;;  %vm1231_vm1 = vcmp.lt.s32.totalorder %v1221_v28, 2500  ;;  %vm1233_vm3 = vcmp.lt.s32.totalorder %v1223_v40, 2500  ;;  %vm1234_vm4 = vcmp.lt.s32.totalorder %v1224_v44, 2500 }
 0x155   : > { %1145 = vmatpush.bf16.msrb.mxu1 %v1748_v33  ;;  %1158 = vmatpush.bf16.msrb.mxu2 %v1792_v39  ;;  %v1226_v1 = vadd.s32 %v3165_v25, %v1215_v59  ;;  %vm1235_vm5 = vcmp.lt.s32.totalorder %v1225_v63, 2500  ;;  %v1228_v17 = vadd.s32 %v3165_v25, %v1217_v10  ;;  %v649_v19 = vperm.slane %v3170_v27, 7 }
 0x156   : > { %1172 = vmatpush.bf16.msrb.mxu3 %v1796_v41  ;;  %vm1232_vm2 = vcmp.lt.s32.totalorder %v1222_v30, 2500 }
 0x157   : > { %1132 = vmatmul.bf16.vlgmr.msrb.gmra.mxu0 %v3061_v11  ;;  %vm1236_vm6 = vcmp.lt.s32.totalorder %v1226_v1, 2500  ;;  %vm1238_vm8 = vcmp.lt.s32.totalorder %v1228_v17, 2500 }
 0x158   : > { %1180 = vmatpush.bf16.msra.mxu0 %v2040_v34  ;;  %1146 = vmatmul.bf16.vlgmr.msrb.gmra.mxu1 %v3061_v11 }
 0x159   : > { %1194 = vmatpush.bf16.msra.mxu1 %v2044_v35  ;;  %1159 = vmatpush.bf16.msrb.mxu2 %v1752_v50 }
 0x15a   : > { %1173 = vmatpush.bf16.msrb.mxu3 %v1756_v53 }
 0x15c   : > { %1181 = vmatpush.bf16.msra.mxu0 %v2000_v46  ;;  %1160 = vmatmul.bf16.vlgmr.msrb.gmra.mxu2 %v3061_v11  ;;  %v645_v46 = vperm.slane %v3170_v27, 3 }
 0x15d   : > { %1195 = vmatpush.bf16.msra.mxu1 %v2004_v47  ;;  %1174 = vmatmul.bf16.vlgmr.msrb.gmra.mxu3 %v3061_v11 }
 0x160   : > { %1182 = vmatpush.bf16.msra.mxu0 %v1960_v54 }
 0x161   : > { %1196 = vmatpush.bf16.msra.mxu1 %v1964_v55 }
 0x164   : > { %1183 = vmatpush.bf16.msra.mxu0 %v1920_v60 }
 0x165   : > { %1197 = vmatpush.bf16.msra.mxu1 %v1924_v61 }
 0x168   : > { %1184 = vmatpush.bf16.msra.mxu0 %v1880_v2  ;;  %v647_v2 = vperm.slane %v3170_v27, 5 }
 0x169   : > { %1198 = vmatpush.bf16.msra.mxu1 %v1884_v3 }
 0x16c   : > { %1185 = vmatpush.bf16.msra.mxu0 %v1840_v8 }
 0x16d   : > { %1199 = vmatpush.bf16.msra.mxu1 %v1844_v9  ;;  %v1216_v9 = vadd.s32 768, %v3163_v24 }
 0x16f   : > { %v1227_v13 = vadd.s32 %v3165_v25, %v1216_v9 }
 0x170   : > { %1186 = vmatpush.bf16.msra.mxu0 %v1800_v15 }
 0x171   : > { %1200 = vmatpush.bf16.msra.mxu1 %v1804_v16  ;;  %v648_v16 = vperm.slane %v3170_v27, 6  ;;  %vm1237_vm7 = vcmp.lt.s32.totalorder %v1227_v13, 2500 }
 0x174   : > { %1187 = vmatpush.bf16.msra.mxu0 %v1760_v21 }
 0x175   : > { %1201 = vmatpush.bf16.msra.mxu1 %v1764_v22 }
 0x177   : > { %1188 = vmatmul.bf16.vlgmr.msra.gmra.mxu0 %v3061_v11 }
 0x178   : > { %1202 = vmatmul.bf16.vlgmr.msra.gmra.mxu1 %v3061_v11  ;;  %v643_v11 = vperm.slane %v3170_v27, 1  ;;  %v1218_v27 = vadd.s32 1024, %v3163_v24 }
 0x17a   : > { %v1229_v40 = vadd.s32 %v3165_v25, %v1218_v27 }
 0x17c   : > { %vm1239_vm9 = vcmp.lt.s32.totalorder %v1229_v40, 2500 }
 0x1b4   : > { %v1077_v31 = vpop.f32.mrf.mxu0 }
 0x1b5   : > { %v1078_v32 = vadd.f32 %v1077_v31, %v642_v29  ;;  %v1091_v33 = vpop.f32.mrf.mxu1 }
 0x1b6   : > { %v1092_v34 = vadd.f32 %v1091_v33, %v643_v11 }
 0x1b7   : > { %v3178_v35 = vsel %vm1231_vm1, %v1078_v32, -1e+30 }
 0x1b8   : > { %v3180_v36 = vsel %vm1232_vm2, %v1092_v34, -1e+30  ;;  %v1219_v34 = vadd.s32 1152, %v3163_v24 }
 0x1bc   : > { %v1079_v39 = vpop.f32.mrf.mxu0 }
 0x1bd   : > { %v1080_v41 = vadd.f32 %v1079_v39, %v642_v29  ;;  %v1093_v42 = vpop.f32.mrf.mxu1 }
 0x1be   : > { %v1094_v45 = vadd.f32 %v1093_v42, %v643_v11  ;;  %v1230_v42 = vadd.s32 %v3165_v25, %v1219_v34 }
 0x1bf   : > { %v3189_v47 = vsel %vm1231_vm1, %v1080_v41, -1e+30  ;;  %v1105_v49 = vpop.f32.mrf.mxu2  ;;  %v650_v41 = vperm.slane %v639_v38, 0 }
 0x1c0   : > { %v3191_v48 = vsel %vm1232_vm2, %v1094_v45, -1e+30  ;;  %v1106_v50 = vadd.f32 %v1105_v49, %v644_v43  ;;  %vm1240_vm10 = vcmp.lt.s32.totalorder %v1230_v42, 2500 }
 0x1c2   : > { %v1119_v51 = vpop.f32.mrf.mxu3  ;;  %v3193_v53 = vsel %vm1233_vm3, %v1106_v50, -1e+30 }
 0x1c3   : > { %v1120_v52 = vadd.f32 %v1119_v51, %v645_v46 }
 0x1c5   : > { %v3195_v54 = vsel %vm1234_vm4, %v1120_v52, -1e+30 }
 0x1c7   : > { %v1107_v55 = vpop.f32.mrf.mxu2 }
 0x1c8   : > { %v1108_v57 = vadd.f32 %v1107_v55, %v644_v43  ;;  %v651_v43 = vperm.slane %v639_v38, 1 }
 0x1ca   : > { %v1121_v58 = vpop.f32.mrf.mxu3  ;;  %v3199_v61 = vsel %vm1233_vm3, %v1108_v57, -1e+30 }
 0x1cb   : > { %v1122_v60 = vadd.f32 %v1121_v58, %v645_v46 }
 0x1cd   : > { %v3201_v62 = vsel %vm1234_vm4, %v1122_v60, -1e+30 }
 0x1d4   : > { %v1133_v3 = vpop.f32.mrf.mxu0 }
 0x1d5   : > { %v1134_v4 = vadd.f32 %v1133_v3, %v646_v0  ;;  %v1147_v5 = vpop.f32.mrf.mxu1 }
 0x1d6   : > { %v1148_v6 = vadd.f32 %v1147_v5, %v647_v2 }
 0x1d7   : > { %v3208_v7 = vsel %vm1235_vm5, %v1134_v4, -1e+30 }
 0x1d8   : > { %v3210_v8 = vsel %vm1236_vm6, %v1148_v6, -1e+30 }
 0x1dc   : > { %v1135_v12 = vpop.f32.mrf.mxu0 }
 0x1dd   : > { %v1136_v14 = vadd.f32 %v1135_v12, %v646_v0  ;;  %v1149_v15 = vpop.f32.mrf.mxu1 }
 0x1de   : > { %v1150_v18 = vadd.f32 %v1149_v15, %v647_v2 }
 0x1df   : > { %v3219_v20 = vsel %vm1235_vm5, %v1136_v14, -1e+30  ;;  %v1161_v22 = vpop.f32.mrf.mxu2 }
 0x1e0   : > { %v3221_v21 = vsel %vm1236_vm6, %v1150_v18, -1e+30  ;;  %v1162_v23 = vadd.f32 %v1161_v22, %v648_v16  ;;  %v1175_v26 = vpop.f32.mrf.mxu3 }
 0x1e1   : > { %v1176_v28 = vadd.f32 %v1175_v26, %v649_v19 }
 0x1e2   : > { %v3223_v29 = vsel %vm1237_vm7, %v1162_v23, -1e+30 }
 0x1e3   : > { %v3225_v30 = vsel %vm1238_vm8, %v1176_v28, -1e+30 }
 0x1e7   : > { %v1163_v11 = vpop.f32.mrf.mxu2 }
 0x1e8   : > { %v1164_v31 = vadd.f32 %v1163_v11, %v648_v16  ;;  %v1177_v32 = vpop.f32.mrf.mxu3 }
 0x1e9   : > { %v1178_v33 = vadd.f32 %v1177_v32, %v649_v19 }
 0x1ea   : > { %v3229_v37 = vsel %vm1237_vm7, %v1164_v31, -1e+30 }
 0x1eb   : > { %v3233_v39 = vsel %vm1238_vm8, %v1178_v33, -1e+30 }
 0x1f4   : > { %v1189_v44 = vpop.f32.mrf.mxu0 }
 0x1f5   : > { %v1190_v45 = vadd.f32 %v1189_v44, %v650_v41  ;;  %v1203_v46 = vpop.f32.mrf.mxu1 }
 0x1f6   : > { %v1204_v49 = vadd.f32 %v1203_v46, %v651_v43 }
 0x1f7   : > { %v3237_v50 = vsel %vm1239_vm9, %v1190_v45, -1e+30 }
 0x1f8   : > { %v3239_v24 = vsel %vm1240_vm10, %v1204_v49, -1e+30 }
 0x1fc   : > { %v1191_v51 = vpop.f32.mrf.mxu0  ;;  %1263 = sbr.rel (%p2045_p6) target bundleno = 913 (0x391), region = 64 }
 0x1fd   : > { %v1192_v52 = vadd.f32 %v1191_v51, %v650_v41  ;;  %v1205_v55 = vpop.f32.mrf.mxu1 }
 0x1fe   : > { %v1206_v56 = vadd.f32 %v1205_v55, %v651_v43 }
 0x1ff   : > { %v3241_v57 = vsel %vm1239_vm9, %v1192_v52, -1e+30 }
 0x200   : > { %v3243_v58 = vsel %vm1240_vm10, %v1206_v56, -1e+30 }
 0x201   : > { %v1266_v25 = vmax.f32 %v3178_v35, %v3193_v53  ;;  %v1267_v59 = vmax.f32 %v3180_v36, %v3195_v54  ;;  %v1277_v60 = vmax.f32 %v3189_v47, %v3199_v61  ;;  %v1278_v63 = vmax.f32 %v3191_v48, %v3201_v62  ;;  %v3266_v18 = vld [vmem:[#allocation3] sm:$0xff]  ;;  %v3276_v26 = vld [vmem:[#allocation3 + $0x8] sm:$0xff] }
 0x202   : > { %v2696_v17 = vmov 0   ;;  %vm1394_vm11 = vcmask 7168  }
 0x203   : > { %v1268_v0 = vmax.f32 %v1266_v25, %v3208_v7  ;;  %v1269_v1 = vmax.f32 %v1267_v59, %v3210_v8  ;;  %v1279_v2 = vmax.f32 %v1277_v60, %v3219_v20  ;;  %v1280_v3 = vmax.f32 %v1278_v63, %v3221_v21  ;;  %2343 = vset.pattern.permute.xlu1 %v2696_v17 }
 0x204   : > { %2344 = vset.pattern.permute.xlu0 %v2696_v17 }
 0x205   : > { %v1270_v4 = vmax.f32 %v1268_v0, %v3223_v29  ;;  %v1271_v5 = vmax.f32 %v1269_v1, %v3225_v30  ;;  %v1281_v10 = vmax.f32 %v1279_v2, %v3229_v37  ;;  %v1282_v12 = vmax.f32 %v1280_v3, %v3233_v39 }
 0x207   : > { %v1272_v6 = vmax.f32 %v1270_v4, %v3237_v50  ;;  %v1273_v9 = vmax.f32 %v1271_v5, %v3239_v24  ;;  %v1283_v14 = vmax.f32 %v1281_v10, %v3241_v57  ;;  %v1284_v15 = vmax.f32 %v1282_v12, %v3243_v58 }
 0x209   : > { %v1274_v13 = vmax.f32 %v1272_v6, %v1273_v9  ;;  %v1285_v16 = vmax.f32 %v1283_v14, %v1284_v15 }
 0x20b   : > { %1275 = vmax.xlane.f32.xlu0 %v1274_v13 }
 0x213   : > { %1286 = vmax.xlane.f32.xlu0 %v1285_v16 }
 0x27e   : > { %v1276_v19 = vpop.xlane.xlu0 %1275 }
 0x27f   : > { %v3269_v22 = vmax.f32 %v3266_v18, %v1276_v19 }
 0x281   : > { %v1290_v23 = vsub.f32 %v3266_v18, %v3269_v22  ;;  %1397 = vst.msk [vmem:[#allocation3] sm:$0xff] %vm1394_vm11, %v3269_v22  ;;  %1302 = vperm.xlu1 %2343, %v3269_v22  }
 0x286   : > { %v1287_v28 = vpop.xlane.xlu0 %1286 }
 0x287   : > { %v3279_v11 = vmax.f32 %v3276_v26, %v1287_v28 }
 0x289   : > { %v1291_v31 = vsub.f32 %v3276_v26, %v3279_v11  ;;  %1398 = vst.msk [vmem:[#allocation3 + $0x8] sm:$0xff] %vm1394_vm11, %v3279_v11  ;;  %1307 = vperm.xlu1 %2343, %v3279_v11  }
 0x2f3   : > { %v1303_v32 = vpop.permute.xlu1 %1302 }
 0x2f4   : > { %v1310_v27 = vsub.f32 %v3178_v35, %v1303_v32  ;;  %v1311_v33 = vsub.f32 %v3180_v36, %v1303_v32  ;;  %v1312_v34 = vsub.f32 %v3193_v53, %v1303_v32  ;;  %v1313_v38 = vsub.f32 %v3195_v54, %v1303_v32 }
 0x2f5   : > { %v1314_v42 = vsub.f32 %v3208_v7, %v1303_v32  ;;  %v1315_v44 = vsub.f32 %v3210_v8, %v1303_v32  ;;  %v1316_v45 = vsub.f32 %v3223_v29, %v1303_v32  ;;  %v1317_v56 = vsub.f32 %v3225_v30, %v1303_v32 }
 0x2f6   : > { %v1330_v40 = vmul.f32 1.442695, %v1310_v27  ;;  %v1332_v41 = vmul.f32 1.442695, %v1311_v33  ;;  %v1334_v43 = vmul.f32 1.442695, %v1312_v34  ;;  %v1318_v0 = vsub.f32 %v3237_v50, %v1303_v32 }
 0x2f7   : > { %v1336_v46 = vmul.f32 1.442695, %v1313_v38  ;;  %v1338_v51 = vmul.f32 1.442695, %v1314_v42  ;;  %v1340_v25 = vmul.f32 1.442695, %v1315_v44  ;;  %v1319_v5 = vsub.f32 %v3239_v24, %v1303_v32 }
 0x2f8   : > { %2345 = vpow2.f32 %v1330_v40  ;;  %v1342_v59 = vmul.f32 1.442695, %v1316_v45  ;;  %v1344_v6 = vmul.f32 1.442695, %v1317_v56  ;;  %v1346_v14 = vmul.f32 1.442695, %v1318_v0 }
 0x2f9   : > { %2347 = vpow2.f32 %v1332_v41  ;;  %v1348_v28 = vmul.f32 1.442695, %v1319_v5 }
 0x2fa   : > { %2349 = vpow2.f32 %v1334_v43 }
 0x2fb   : > { %v3293_v49 = vpop.permute.xlu1 %1307  ;;  %2351 = vpow2.f32 %v1336_v46 }
 0x2fc   : > { %v1320_v52 = vsub.f32 %v3189_v47, %v3293_v49  ;;  %v1321_v55 = vsub.f32 %v3191_v48, %v3293_v49  ;;  %v1322_v60 = vsub.f32 %v3199_v61, %v3293_v49  ;;  %2353 = vpow2.f32 %v1338_v51 }
 0x2fd   : > { %v1323_v2 = vsub.f32 %v3201_v62, %v3293_v49  ;;  %2355 = vpow2.f32 %v1340_v25  ;;  %v1324_v12 = vsub.f32 %v3219_v20, %v3293_v49  ;;  %v1325_v17 = vsub.f32 %v3221_v21, %v3293_v49 }
 0x2fe   : > { %v2346_v63 = vpop.eup %2345  ;;  %v1350_v3 = vmul.f32 1.442695, %v1320_v52  ;;  %v1352_v4 = vmul.f32 1.442695, %v1321_v55  ;;  %2357 = vpow2.f32 %v1342_v59  ;;  %v1354_v13 = vmul.f32 1.442695, %v1322_v60 }
 0x2ff   : > { %v2348_v1 = vpop.eup %2347  ;;  %v1356_v19 = vmul.f32 1.442695, %v1323_v2  ;;  %v1326_v33 = vsub.f32 %v3229_v37, %v3293_v49  ;;  %v1358_v34 = vmul.f32 1.442695, %v1324_v12  ;;  %v1327_v42 = vsub.f32 %v3233_v39, %v3293_v49 }
 0x300   : > { %v1370_v9 = vadd.f32 %v2348_v1, %v2346_v63  ;;  %v2350_v10 = vpop.eup %2349  ;;  %2359 = vpow2.f32 %v1350_v3  ;;  %v1360_v43 = vmul.f32 1.442695, %v1325_v17  ;;  %v1328_v51 = vsub.f32 %v3241_v57, %v3293_v49 }
 0x301   : > { %v2352_v16 = vpop.eup %2351  ;;  %2361 = vpow2.f32 %v1352_v4  ;;  %v1362_v52 = vmul.f32 1.442695, %v1326_v33  ;;  %v1329_v60 = vsub.f32 %v3243_v58, %v3293_v49  ;;  %v1364_v63 = vmul.f32 1.442695, %v1327_v42  ;;  %v1296_v42 = vld [vmem:[#allocation4] sm:$0xff] }
 0x302   : > { %v1371_v15 = vadd.f32 %v2350_v10, %v1370_v9  ;;  %2363 = vpow2.f32 %v1344_v6  ;;  %v2354_v27 = vpop.eup %2353  ;;  %v1366_v4 = vmul.f32 1.442695, %v1328_v51  ;;  %v1297_v51 = vld [vmem:[#allocation4 + $0x8] sm:$0xff] }
 0x303   : > { %2365 = vpow2.f32 %v1354_v13  ;;  %v2356_v38 = vpop.eup %2355  ;;  %v1368_v12 = vmul.f32 1.442695, %v1329_v60 }
 0x304   : > { %v1372_v32 = vadd.f32 %v2352_v16, %v1371_v15  ;;  %2367 = vpow2.f32 %v1346_v14  ;;  %v2358_v41 = vpop.eup %2357 }
 0x305   : > { %2369 = vpow2.f32 %v1356_v19 }
 0x306   : > { %v1373_v40 = vadd.f32 %v2354_v27, %v1372_v32  ;;  %v2360_v44 = vpop.eup %2359  ;;  %2371 = vpow2.f32 %v1348_v28 }
 0x307   : > { %v2362_v46 = vpop.eup %2361  ;;  %2373 = vpow2.f32 %v1358_v34 }
 0x308   : > { %v1374_v45 = vadd.f32 %v2356_v38, %v1373_v40  ;;  %v2364_v55 = vpop.eup %2363  ;;  %v1381_v25 = vadd.f32 %v2362_v46, %v2360_v44  ;;  %2375 = vpow2.f32 %v1360_v43  ;;  %v1292_v38 = vmul.f32 1.442695, %v1290_v23 }
 0x309   : > { %v2366_v59 = vpop.eup %2365  ;;  %2377 = vpow2.f32 %v1362_v52 }
 0x30a   : > { %v1375_v56 = vadd.f32 %v2358_v41, %v1374_v45  ;;  %v2368_v0 = vpop.eup %2367  ;;  %v1382_v2 = vadd.f32 %v2366_v59, %v1381_v25  ;;  %2379 = vpow2.f32 %v1364_v63  ;;  %v1294_v41 = vmul.f32 1.442695, %v1291_v31 }
 0x30b   : > { %v2370_v3 = vpop.eup %2369  ;;  %2381 = vpow2.f32 %v1366_v4 }
 0x30c   : > { %v1376_v1 = vadd.f32 %v2364_v55, %v1375_v56  ;;  %v2372_v5 = vpop.eup %2371  ;;  %v1383_v9 = vadd.f32 %v2370_v3, %v1382_v2  ;;  %2383 = vpow2.f32 %v1368_v12 }
 0x30d   : > { %v2374_v10 = vpop.eup %2373  ;;  %2385 = vpow2.f32 %v1292_v38 }
 0x30e   : > { %v1377_v6 = vadd.f32 %v2368_v0, %v1376_v1  ;;  %v1384_v14 = vadd.f32 %v2374_v10, %v1383_v9  ;;  %v2376_v15 = vpop.eup %2375  ;;  %2387 = vpow2.f32 %v1294_v41 }
 0x30f   : > { %v2378_v16 = vpop.eup %2377 }
 0x310   : > { %v1378_v13 = vadd.f32 %v2372_v5, %v1377_v6  ;;  %v1385_v49 = vadd.f32 %v2376_v15, %v1384_v14  ;;  %v2380_v19 = vpop.eup %2379 }
 0x311   : > { %v2382_v32 = vpop.eup %2381 }
 0x312   : > { %1379 = vadd.xlane.f32.xlu2 %v1378_v13  ;;  %v1386_v17 = vadd.f32 %v2378_v16, %v1385_v49  ;;  %v2384_v33 = vpop.eup %2383 }
 0x313   : > { %v2386_v40 = vpop.eup %2385 }
 0x314   : > { %v1387_v28 = vadd.f32 %v2380_v19, %v1386_v17  ;;  %v1298_v43 = vmul.f32 %v2386_v40, %v1296_v42  ;;  %v2388_v46 = vpop.eup %2387 }
 0x315   : > { %v1299_v52 = vmul.f32 %v2388_v46, %v1297_v51 }
 0x316   : > { %v1388_v27 = vadd.f32 %v2382_v32, %v1387_v28 }
 0x318   : > { %v1389_v34 = vadd.f32 %v2384_v33, %v1388_v27 }
 0x31a   : > { %1390 = vadd.xlane.f32.xlu2 %v1389_v34 }
 0x385   : > { %v1380_v44 = vpop.xlane.xlu2 %1379 }
 0x386   : > { %v1392_v45 = vadd.f32 %v1380_v44, %v1298_v43 }
 0x388   : > { %1395 = vst.msk [vmem:[#allocation4] sm:$0xff] %vm1394_vm11, %v1392_v45 }
 0x38d   : > { %v1391_v55 = vpop.xlane.xlu2 %1390 }
 0x38e   : > { %v1393_v56 = vadd.f32 %v1391_v55, %v1299_v52 }
 0x390   : > { %1396 = vst.msk [vmem:[#allocation4 + $0x8] sm:$0xff] %vm1394_vm11, %v1393_v56 }
 0x391 PF: > { %s3496_s11 = sld [smem:[#allocation19_spill]] }
 0x397   : > { %p1399_p7 = scmp.eq.s32.totalorder %s3496_s11, 1 }
 0x399   : > { %p1400_p8 = pnand %p1399_p7, %p367_p0 }
 0x39b   : > { %1403 = sbr.rel (%p1400_p8) target bundleno = 942 (0x3ae), region = 68 }
 0x3a0   : > { %v1406_v18 = vld [vmem:[#allocation4] sm:$0xff]  ;;  %v1407_v22 = vld [vmem:[#allocation4 + $0x8] sm:$0xff]  ;;  %v1404_v26 = vld [vmem:[#allocation3] sm:$0xff]  ;;  %vm1414_vm12 = vcmask 7168  }
 0x3a1   : > { %2389 = vlog2.f32 %v1406_v18  ;;  %v1405_v25 = vld [vmem:[#allocation3 + $0x8] sm:$0xff] }
 0x3a2   : > { %2391 = vlog2.f32 %v1407_v22 }
 0x3a7   : > { %v2390_v23 = vpop.eup %2389 }
 0x3a8   : > { %v2392_v11 = vpop.eup %2391  ;;  %v1409_v31 = vmul.f32 0.6931472, %v2390_v23 }
 0x3a9   : > { %v1411_v59 = vmul.f32 0.6931472, %v2392_v11 }
 0x3aa   : > { %v1412_v60 = vadd.f32 %v1409_v31, %v1404_v26 }
 0x3ab   : > { %v1413_v63 = vadd.f32 %v1411_v59, %v1405_v25 }
 0x3ac   : > { %1415 = vst.msk [vmem:[#allocation5] sm:$0xff] %vm1414_vm12, %v1412_v60 }
 0x3ad   : > { %1416 = vst.msk [vmem:[#allocation5 + $0x8] sm:$0xff] %vm1414_vm12, %v1413_v63 }
 0x3ae PF: > { %s3498_s0 = sld [smem:[#allocation20_spill]] }
 0x3b4   : > { %p2046_p10 = scmp.ne.s32.totalorder %s3498_s0, 1 }
 0x3b6   : > { %1420 = sbr.rel (%p2046_p10) target bundleno = 1094 (0x446), region = 72 }
 0x3bb   : > { %v1421_v0 = vld [vmem:[#allocation5] sm:$0xff]  ;;  %v2697_v1 = vmov 0   ;;  %v1422_v2 = vld [vmem:[#allocation5 + $0x8] sm:$0xff] }
 0x3bc   : > { %2393 = vset.pattern.permute.xlu0 %v2697_v1 }
 0x3bd   : > { %1425 = vperm.xlu0 %2393, %v1421_v0  }
 0x3c5   : > { %1430 = vperm.xlu0 %2393, %v1422_v2  }
 0x42f   : > { %v1426_v3 = vpop.permute.xlu0 %1425 }
 0x430   : > { %v1433_v4 = vsub.f32 %v3178_v35, %v1426_v3  ;;  %v1434_v5 = vsub.f32 %v3180_v36, %v1426_v3  ;;  %v1435_v6 = vsub.f32 %v3193_v53, %v1426_v3  ;;  %v1436_v9 = vsub.f32 %v3195_v54, %v1426_v3 }
 0x431   : > { %v1437_v10 = vsub.f32 %v3208_v7, %v1426_v3  ;;  %v1438_v12 = vsub.f32 %v3210_v8, %v1426_v3  ;;  %v1439_v13 = vsub.f32 %v3223_v29, %v1426_v3  ;;  %v1440_v35 = vsub.f32 %v3225_v30, %v1426_v3 }
 0x432   : > { %1453 = vst [vmem:[%s2981_s29] sm:$0xff] %v1433_v4  ;;  %v1441_v36 = vsub.f32 %v3237_v50, %v1426_v3  ;;  %v1442_v53 = vsub.f32 %v3239_v24, %v1426_v3 }
 0x433   : > { %1454 = vst [vmem:[%s2981_s29 + $0x8] sm:$0xff] %v1434_v5 }
 0x434   : > { %1455 = vst [vmem:[%s2981_s29 + $0x10] sm:$0xff] %v1435_v6 }
 0x435   : > { %1456 = vst [vmem:[%s2981_s29 + $0x18] sm:$0xff] %v1436_v9 }
 0x436   : > { %1457 = vst [vmem:[%s2981_s29 + $0x20] sm:$0xff] %v1437_v10 }
 0x437   : > { %1458 = vst [vmem:[%s2981_s29 + $0x28] sm:$0xff] %v1438_v12  ;;  %v1431_v54 = vpop.permute.xlu0 %1430 }
 0x438   : > { %1459 = vst [vmem:[%s2981_s29 + $0x30] sm:$0xff] %v1439_v13  ;;  %v1443_v7 = vsub.f32 %v3189_v47, %v1431_v54  ;;  %v1444_v8 = vsub.f32 %v3191_v48, %v1431_v54  ;;  %v1445_v29 = vsub.f32 %v3199_v61, %v1431_v54  ;;  %v1446_v30 = vsub.f32 %v3201_v62, %v1431_v54 }
 0x439   : > { %1460 = vst [vmem:[%s2981_s29 + $0x38] sm:$0xff] %v1440_v35  ;;  %v1447_v50 = vsub.f32 %v3219_v20, %v1431_v54  ;;  %v1448_v47 = vsub.f32 %v3221_v21, %v1431_v54  ;;  %v1449_v24 = vsub.f32 %v3229_v37, %v1431_v54  ;;  %v1450_v48 = vsub.f32 %v3233_v39, %v1431_v54 }
 0x43a   : > { %1461 = vst [vmem:[%s2981_s29 + $0x40] sm:$0xff] %v1441_v36  ;;  %v1451_v61 = vsub.f32 %v3241_v57, %v1431_v54  ;;  %v1452_v14 = vsub.f32 %v3243_v58, %v1431_v54 }
 0x43b   : > { %1462 = vst [vmem:[%s2981_s29 + $0x48] sm:$0xff] %v1442_v53 }
 0x43c   : > { %1463 = vst [vmem:[%s2981_s29 + $0x50] sm:$0xff] %v1443_v7 }
 0x43d   : > { %1464 = vst [vmem:[%s2981_s29 + $0x58] sm:$0xff] %v1444_v8 }
 0x43e   : > { %1465 = vst [vmem:[%s2981_s29 + $0x60] sm:$0xff] %v1445_v29 }
 0x43f   : > { %1466 = vst [vmem:[%s2981_s29 + $0x68] sm:$0xff] %v1446_v30 }
 0x440   : > { %1467 = vst [vmem:[%s2981_s29 + $0x70] sm:$0xff] %v1447_v50 }
 0x441   : > { %1468 = vst [vmem:[%s2981_s29 + $0x78] sm:$0xff] %v1448_v47 }
 0x442   : > { %1469 = vst [vmem:[%s2981_s29 + $0x80] sm:$0xff] %v1449_v24 }
 0x443   : > { %1470 = vst [vmem:[%s2981_s29 + $0x88] sm:$0xff] %v1450_v48 }
 0x444   : > { %1471 = vst [vmem:[%s2981_s29 + $0x90] sm:$0xff] %v1451_v61 }
 0x445   : > { %1472 = vst [vmem:[%s2981_s29 + $0x98] sm:$0xff] %v1452_v14 }
 0x446 PF: > { %s3499_s3 = sld [smem:[#allocation20_spill]]  ;;  %s1490_s15 = sshll.u32 %s2981_s29, 4  ;;  %s1491_s15 = int_to_ptr.vmem [resolvable:$true] %s1490_s15 }
 0x447   : > { %s3500_s27 = sld [smem:[#allocation19_spill]]  ;;  %s1474_s5 = scalar_lea.sflag [#allocation8], %s358_s10 }
 0x448   : > { %s3501_s4 = sld [smem:[#allocation21_spill]] }
 0x449   : > { %s3502_s9 = sld [smem:[#allocation35_spill]] }
 0x44d   : > { %s1481_s26 = smul.u32 %s3500_s27, %s3499_s3 }
 0x44e   : > { %s2164_s7 = smul.u32 40, %s3501_s4 }
 0x44f   : > { %s1483_s2 = smul.u32 10, %s1481_s26  ;;  %s2534_s0 = scalar_lea.hbm %s3502_s9, 640 }
 0x451   : > { %s1487_s28 = sadd.s32 %s2164_s7, %s1483_s2 }
 0x452   : > { %s2049_s14 = sshll.u32 %s1487_s28, 3 }
 0x453   : > { %s1489_s12 = scalar_lea.hbm %s3502_s9, %s2049_s14 }
 0x454   : > { %s1492_s6 = sshll.u32 %s1489_s12, 4  ;;  %s1493_s6 = int_to_ptr.hbm [resolvable:$true] %s1492_s6 }
 0x455   : > { %s2528_s16 = sshra.s32 %s1493_s6, 4  ;;  %s2529_s16 = int_to_ptr.hbm [resolvable:$true] %s2528_s16 }
 0x456   : > { %s2530_s11 = scalar_lea.hbm %s2529_s16, 160  ;;  %p2535_p2 = scmp.lt.s32.totalorder %s2529_s16, %s3502_s9 }
 0x457   : > { %p2531_p11 = scmp.ne.s32.totalorder %s2529_s16, %s2530_s11  ;;  %p2536_p4 = scmp.lt.s32.totalorder %s2534_s0, %s2530_s11 }
 0x459   : > { %p2532_p3 = pnand %p2531_p11, %p2920_p9  ;;  %p2537_p0 = por %p2536_p4, %p2535_p2 }
 0x45b   : > { %p2533_p13 = pneg %p2532_p3 }
 0x45d   : > { %p2538_p1 = pnand %p2537_p0, %p2533_p13 }
 0x45f   : > { %2541 = shalt.err (!%p2538_p1)
}
 0x460   : > { %s2698_s10 = smov 1280   ;;  %s2699_s4 = smov 2560  }
 0x461   : > { %s2700_s26 = smov 80  }
 0x462   : > { %2175 = dma.vmem_to_hbm [thread:$0]  (%p2920_p9), %s1491_s15, 2560, %s1493_s6, %s1474_s5, %s2698_s10, %s2699_s4, %s2700_s26  }
 0x463 PF: > { %p2198_p5 = scmp.ge.s32.totalorder %s2684_s8, 2  ;;  %s1507_s7 = sand.u32 1, %s2624_s18  }
 0x464   : > { %s1508_s2 = scalar_lea.sflag [#allocation8], %s1507_s7 }
 0x465   : > { %p2192_p6 = pnand %p2198_p5, %p2926_p12 }
 0x467   : > { %p2193_p7 = pneg %p2192_p6 }
 0x469   : > { %2619 = dma.done.wait (%p2193_p7), %s1508_s2, 2560  }
 0x46a   : > { %2621 = vsyncadd (%p2193_p7), %s1508_s2, 4294964736  ;;  %s22_s8 = sadd.s32 1, %s2684_s8   ;;  %s3504_s13 = sld [smem:[#allocation29_spill]] }
 0x46b   : > { %p3394_p8 = scmp.ge.s32.totalorder %s22_s8, 10   ;;  %s3505_s15 = sld [smem:[#allocation26_spill]] }
 0x46c   : > { %s3506_s14 = sld [smem:[#allocation18_spill]]  ;;  %s3513_s18 = smov %s2628_s19 }
 0x46d   : > { %s3507_s26 = sld [smem:[#allocation28_spill]]  ;;  %s3515_s19 = smov %s2632_s20 }
 0x46e   : > { %s3508_s17 = sld [smem:[#allocation22_spill]]  ;;  %s3517_s21 = smov %s2640_s22 }
 0x46f   : > { %s3509_s29 = sld [smem:[#allocation23_spill]]  ;;  %s3518_s22 = smov %s2644_s23 }
 0x470   : > { %s3510_s12 = sld [smem:[#allocation24_spill]]  ;;  %s3516_s20 = smov %s3504_s13 }
 0x471   : > { %s3511_s6 = sld [smem:[#allocation25_spill]]  ;;  %s3519_s23 = smov %s3505_s15 }
 0x472   : > { %s3512_s7 = sld [smem:[#allocation27_spill]]  ;;  %s3520_s24 = smov %s2652_s25 }
 0x473   : > { %s3521_s25 = smov %s3506_s14  ;;  %s3522_s27 = smov %s2672_s30 }
 0x474   : > { %s3523_s28 = smov %s3508_s17  ;;  %21 = sbr.rel (!%p3394_p8) target bundleno = 19 (0x13), region = 127 }
 0x476   : > { %s3524_s30 = smov %s3510_s12 }
 0x479   :  { %1514 = vsyncpa [#allocation7], 1 }
 0x47a   :  { %1516 = vsyncpa [#allocation7 + $0x1], 1 }
 0x47b   :  { %1517 = vsyncpa [#allocation10], 1 }
 0x47c   :  { %1518 = vsyncpa [#allocation8], 1 }
 0x47d   :  { %1520 = vsyncpa [#allocation8 + $0x1], 1 }

</bundles_post_ra>
